<compile_context>
chip_gen: v6e
topology: v6e:2x2x1
jax: 0.10.0
libtpu: 0.0.40
codegen_flags: <defaults>
</compile_context>

<pallas_src>
import functools

import jax
import jax.numpy as jnp
from jax.experimental import pallas as pl
from jax.experimental.pallas import tpu as pltpu


# --------------------------------------------------------------------------- #
# Kernel: fused multi-layer feed-forward on one (tm, K0) row tile.
# --------------------------------------------------------------------------- #
def _ffw_fused_kernel(*refs, num_layers, nonlin, compute_dtype):
    # refs = (x_ref, w1, b1, w2, b2, ..., wL, bL, o_ref)
    x_ref = refs[0]
    o_ref = refs[-1]
    wb = refs[1:-1]

    y = x_ref[...]                                    # (tm, K0)
    for l in range(num_layers):
        w = wb[2 * l][...]                            # (K_l, N_l), bf16
        b = wb[2 * l + 1][...]                        # (1,  N_l), f32
        y = jnp.dot(y.astype(compute_dtype), w,
                    preferred_element_type=jnp.float32) + b
        y = nonlin(y)                                 # stays f32 in vregs
    o_ref[...] = y.astype(o_ref.dtype)                # (tm, n_out) store only


# --------------------------------------------------------------------------- #
# One-time parameter packing (outside the hot path).
# --------------------------------------------------------------------------- #
def prepare_ffw_params(params, compute_dtype=jnp.bfloat16):
    """weights -> [in, out] compute_dtype; biases -> (1, N) f32. No padding."""
    prepared = []
    for (w, b) in params:
        w = jnp.asarray(w).astype(compute_dtype)
        b = jnp.asarray(b, dtype=jnp.float32).reshape(1, -1)
        prepared.append((w, b))
    return prepared


# --------------------------------------------------------------------------- #
# Row-tile choice: big tiles for DMA efficiency, but >= 2 grid steps when the
# batch allows it so the "parallel" axis can shard across v7x's 2 TensorCores.
# --------------------------------------------------------------------------- #
def _choose_tm(M, tm_req):
    tm = min(tm_req, M)
    if tm < M:
        tm = max(8, (tm // 8) * 8)
    if pl.cdiv(M, tm) < 2 and M >= 16:
        tm = max(8, (((M + 1) // 2) + 7) // 8 * 8)
    return tm


# --------------------------------------------------------------------------- #
# Forward pass: one fused pallas_call over a tiled batch.
# --------------------------------------------------------------------------- #
def ffw_forward(x, prepared, *, nonlin=lambda v: v, tm=1024,
                compute_dtype=jnp.bfloat16, out_dtype=None):
    M, K0 = x.shape
    num_layers = len(prepared)
    n_out = prepared[-1][0].shape[1]
    out_dtype = x.dtype if out_dtype is None else out_dtype

    tm = _choose_tm(M, tm)
    grid = (pl.cdiv(M, tm),)

    in_specs = [pl.BlockSpec((tm, K0), lambda i: (i, 0))]   # streamed x tile
    flat_wb = []
    for (w, b) in prepared:
        # Full-array blocks with constant index_map -> VMEM-resident params.
        in_specs.append(pl.BlockSpec(w.shape, lambda i: (0, 0)))
        in_specs.append(pl.BlockSpec(b.shape, lambda i: (0, 0)))
        flat_wb += [w, b]

    # Explicit scoped-VMEM budget (double-buffered x/out streams + resident
    # params + headroom), clamped to be safe on v5e (16 MiB default) and
    # v7x (64 MiB physical).
    param_bytes = sum(int(a.size) * a.dtype.itemsize for a in flat_wb)
    stream_bytes = 2 * tm * (K0 * jnp.dtype(x.dtype).itemsize
                             + n_out * jnp.dtype(out_dtype).itemsize)
    vmem_limit = int(min(max(2 * (param_bytes + stream_bytes) + (8 << 20),
                             16 << 20), 48 << 20))

    kernel = functools.partial(
        _ffw_fused_kernel,
        num_layers=num_layers,
        nonlin=nonlin,
        compute_dtype=compute_dtype,
    )

    return pl.pallas_call(
        kernel,
        out_shape=jax.ShapeDtypeStruct((M, n_out), out_dtype),
        grid=grid,
        in_specs=in_specs,
        # Block last dim == full array dim (n_out) -> legal; stores only the
        # real columns, no padded writeback and no wrapper slice.
        out_specs=pl.BlockSpec((tm, n_out), lambda i: (i, 0)),
        compiler_params=pltpu.CompilerParams(
            dimension_semantics=("parallel",),
            vmem_limit_bytes=vmem_limit),
    )(x, *flat_wb)


# --------------------------------------------------------------------------- #
# Parameter init mirroring nn.Linear's U(-1/sqrt(in), 1/sqrt(in)).
# --------------------------------------------------------------------------- #
def init_ffw_params(key, layer_sizes, dtype=jnp.float32):
    params = []
    for in_f, out_f in zip(layer_sizes[:-1], layer_sizes[1:]):
        key, kw, kb = jax.random.split(key, 3)
        bound = 1.0 / jnp.sqrt(jnp.float32(in_f))
        # stored as [in, out] (transpose of PyTorch's [out, in])
        w = jax.random.uniform(kw, (in_f, out_f), dtype, -bound, bound)
        b = jax.random.uniform(kb, (out_f,), dtype, -bound, bound)
        params.append((w, b))
    return params


if __name__ == "__main__":
    key = jax.random.PRNGKey(0)
    k_x, k_p = jax.random.split(key)

    batch = 1024                               # -> 2 grid steps of tm=512
    layer_sizes = [32, 64, 64, 16]             # Linear(32,64), (64,64), (64,16)
    relu = lambda v: jnp.maximum(v, 0.0)       # ReLU (ffw default = identity)

    # Input produced in bf16 upstream (halves input DMA; in-kernel cast no-op).
    x = jax.random.normal(k_x, (batch, layer_sizes[0]), dtype=jnp.bfloat16)
    params_f32 = init_ffw_params(k_p, layer_sizes)
    prepared = prepare_ffw_params(params_f32)

    out = ffw_forward(x, prepared, nonlin=relu, tm=1024)
    out = jax.block_until_ready(out)
    assert out.shape == (batch, layer_sizes[-1])
    assert out.dtype == x.dtype

    # Reference 1: pure-JAX with the SAME bf16-input / f32-accum arithmetic.
    ref = x
    for (w, b) in prepared:
        ref = relu(jnp.dot(ref.astype(jnp.bfloat16), w,
                           preferred_element_type=jnp.float32) + b)
    ref = ref.astype(out.dtype)
    assert jnp.allclose(out.astype(jnp.float32), ref.astype(jnp.float32),
                        atol=5e-3, rtol=5e-3)

    # Reference 2 (sanity): full-f32 forward, loose tolerance for bf16 params.
    ref32 = x.astype(jnp.float32)
    for (w, b) in params_f32:
        ref32 = relu(ref32 @ w + b)
    assert jnp.allclose(out.astype(jnp.float32), ref32, atol=1e-1, rtol=1e-1)

    print("KERNEL_OK")
</pallas_src>

<mosaic_0001>
module attributes {stable_mosaic.version = 11 : i64} {
  func.func @_ffw_fused_kernel(%arg0: i32, %arg1: memref<512x32xbf16, #tpu.memory_space<vmem>>, %arg2: memref<32x64xbf16, #tpu.memory_space<vmem>>, %arg3: memref<1x64xf32, #tpu.memory_space<vmem>>, %arg4: memref<64x64xbf16, #tpu.memory_space<vmem>>, %arg5: memref<1x64xf32, #tpu.memory_space<vmem>>, %arg6: memref<64x16xbf16, #tpu.memory_space<vmem>>, %arg7: memref<1x16xf32, #tpu.memory_space<vmem>>, %arg8: memref<512x16xbf16, #tpu.memory_space<vmem>>) attributes {dimension_semantics = [#tpu.dimension_semantics<parallel>], iteration_bounds = array<i64: 2>, scalar_prefetch = 0 : i64, scratch_operands = 0 : i64, tpu.core_type = #tpu.core_type<tc>, window_params = [{transform_indices = @transform_0, window_bounds = array<i64: 512, 32>}, {pipeline_mode = #tpu.pipeline_mode<synchronous>, transform_indices = @transform_1, window_bounds = array<i64: 32, 64>}, {pipeline_mode = #tpu.pipeline_mode<synchronous>, transform_indices = @transform_2, window_bounds = array<i64: 1, 64>}, {pipeline_mode = #tpu.pipeline_mode<synchronous>, transform_indices = @transform_3, window_bounds = array<i64: 64, 64>}, {pipeline_mode = #tpu.pipeline_mode<synchronous>, transform_indices = @transform_4, window_bounds = array<i64: 1, 64>}, {pipeline_mode = #tpu.pipeline_mode<synchronous>, transform_indices = @transform_5, window_bounds = array<i64: 64, 16>}, {pipeline_mode = #tpu.pipeline_mode<synchronous>, transform_indices = @transform_6, window_bounds = array<i64: 1, 16>}, {transform_indices = @transform_7, window_bounds = array<i64: 512, 16>}]} {
    %c0 = arith.constant 0 : index
    %c0_0 = arith.constant 0 : index
    %0 = vector.load %arg1[%c0, %c0_0] : memref<512x32xbf16, #tpu.memory_space<vmem>>, vector<512x32xbf16>
    %c0_1 = arith.constant 0 : index
    %c0_2 = arith.constant 0 : index
    %1 = vector.load %arg2[%c0_1, %c0_2] : memref<32x64xbf16, #tpu.memory_space<vmem>>, vector<32x64xbf16>
    %c0_3 = arith.constant 0 : index
    %c0_4 = arith.constant 0 : index
    %2 = vector.load %arg3[%c0_3, %c0_4] : memref<1x64xf32, #tpu.memory_space<vmem>>, vector<1x64xf32>
    %cst = arith.constant dense<0.000000e+00> : vector<512x64xf32>
    %3 = tpu.matmul %0, %1, %cst {dimension_numbers = #tpu.dot_dimension_numbers<[1], [0], [0], [1], [0, 0, 1, 1], [], []>} : vector<512x32xbf16>, vector<32x64xbf16>, vector<512x64xf32> -> vector<512x64xf32>
    %4 = vector.broadcast %2 : vector<1x64xf32> to vector<512x64xf32>
    %5 = arith.addf %3, %4 : vector<512x64xf32>
    %cst_5 = arith.constant 0.000000e+00 : f32
    %6 = vector.broadcast %cst_5 : f32 to vector<512x64xf32>
    %7 = arith.maximumf %5, %6 : vector<512x64xf32>
    %c0_6 = arith.constant 0 : index
    %c0_7 = arith.constant 0 : index
    %8 = vector.load %arg4[%c0_6, %c0_7] : memref<64x64xbf16, #tpu.memory_space<vmem>>, vector<64x64xbf16>
    %c0_8 = arith.constant 0 : index
    %c0_9 = arith.constant 0 : index
    %9 = vector.load %arg5[%c0_8, %c0_9] : memref<1x64xf32, #tpu.memory_space<vmem>>, vector<1x64xf32>
    %10 = arith.truncf %7 : vector<512x64xf32> to vector<512x64xbf16>
    %cst_10 = arith.constant dense<0.000000e+00> : vector<512x64xf32>
    %11 = tpu.matmul %10, %8, %cst_10 {dimension_numbers = #tpu.dot_dimension_numbers<[1], [0], [0], [1], [0, 0, 1, 1], [], []>} : vector<512x64xbf16>, vector<64x64xbf16>, vector<512x64xf32> -> vector<512x64xf32>
    %12 = vector.broadcast %9 : vector<1x64xf32> to vector<512x64xf32>
    %13 = arith.addf %11, %12 : vector<512x64xf32>
    %cst_11 = arith.constant 0.000000e+00 : f32
    %14 = vector.broadcast %cst_11 : f32 to vector<512x64xf32>
    %15 = arith.maximumf %13, %14 : vector<512x64xf32>
    %c0_12 = arith.constant 0 : index
    %c0_13 = arith.constant 0 : index
    %16 = vector.load %arg6[%c0_12, %c0_13] : memref<64x16xbf16, #tpu.memory_space<vmem>>, vector<64x16xbf16>
    %c0_14 = arith.constant 0 : index
    %c0_15 = arith.constant 0 : index
    %17 = vector.load %arg7[%c0_14, %c0_15] : memref<1x16xf32, #tpu.memory_space<vmem>>, vector<1x16xf32>
    %18 = arith.truncf %15 : vector<512x64xf32> to vector<512x64xbf16>
    %cst_16 = arith.constant dense<0.000000e+00> : vector<512x16xf32>
    %19 = tpu.matmul %18, %16, %cst_16 {dimension_numbers = #tpu.dot_dimension_numbers<[1], [0], [0], [1], [0, 0, 1, 1], [], []>} : vector<512x64xbf16>, vector<64x16xbf16>, vector<512x16xf32> -> vector<512x16xf32>
    %20 = vector.broadcast %17 : vector<1x16xf32> to vector<512x16xf32>
    %21 = arith.addf %19, %20 : vector<512x16xf32>
    %cst_17 = arith.constant 0.000000e+00 : f32
    %22 = vector.broadcast %cst_17 : f32 to vector<512x16xf32>
    %23 = arith.maximumf %21, %22 : vector<512x16xf32>
    %24 = arith.truncf %23 : vector<512x16xf32> to vector<512x16xbf16>
    %c0_18 = arith.constant 0 : index
    %c0_19 = arith.constant 0 : index
    %25 = vector.load %arg8[%c0_18, %c0_19] : memref<512x16xbf16, #tpu.memory_space<vmem>>, vector<512x16xbf16>
    tpu.vector_store %arg8[%c0_18, %c0_19], %24 {strides = array<i32>} : memref<512x16xbf16, #tpu.memory_space<vmem>>, vector<512x16xbf16>,
    return
  }
  func.func @transform_0(%arg0: i32) -> (i32, i32) {
    %c0_i32 = arith.constant 0 : i32
    %c0_i32_0 = arith.constant 0 : i32
    return %arg0, %c0_i32 : i32, i32
  }
  func.func @transform_1(%arg0: i32) -> (i32, i32) {
    %c0_i32 = arith.constant 0 : i32
    %c0_i32_0 = arith.constant 0 : i32
    %c0_i32_1 = arith.constant 0 : i32
    return %c0_i32, %c0_i32_0 : i32, i32
  }
  func.func @transform_2(%arg0: i32) -> (i32, i32) {
    %c0_i32 = arith.constant 0 : i32
    %c0_i32_0 = arith.constant 0 : i32
    %c0_i32_1 = arith.constant 0 : i32
    return %c0_i32, %c0_i32_0 : i32, i32
  }
  func.func @transform_3(%arg0: i32) -> (i32, i32) {
    %c0_i32 = arith.constant 0 : i32
    %c0_i32_0 = arith.constant 0 : i32
    %c0_i32_1 = arith.constant 0 : i32
    return %c0_i32, %c0_i32_0 : i32, i32
  }
  func.func @transform_4(%arg0: i32) -> (i32, i32) {
    %c0_i32 = arith.constant 0 : i32
    %c0_i32_0 = arith.constant 0 : i32
    %c0_i32_1 = arith.constant 0 : i32
    return %c0_i32, %c0_i32_0 : i32, i32
  }
  func.func @transform_5(%arg0: i32) -> (i32, i32) {
    %c0_i32 = arith.constant 0 : i32
    %c0_i32_0 = arith.constant 0 : i32
    %c0_i32_1 = arith.constant 0 : i32
    return %c0_i32, %c0_i32_0 : i32, i32
  }
  func.func @transform_6(%arg0: i32) -> (i32, i32) {
    %c0_i32 = arith.constant 0 : i32
    %c0_i32_0 = arith.constant 0 : i32
    %c0_i32_1 = arith.constant 0 : i32
    return %c0_i32, %c0_i32_0 : i32, i32
  }
  func.func @transform_7(%arg0: i32) -> (i32, i32) {
    %c0_i32 = arith.constant 0 : i32
    %c0_i32_0 = arith.constant 0 : i32
    return %arg0, %c0_i32 : i32, i32
  }
}

</mosaic_0001>

<bundles_post_ra>
// kernel: tpu_custom_call.1
= control target key start
LH: loop header
LB: loop body
LE: loop exit
PB: predicated region body
PF: predicated region fallthrough
CT: control target
= control target key end

     0   :  { %s3098_s24 = smov 0   ;;  %s3679_s0 = inlined_call_operand.vmem [shape: bf16[1024,32], index: 0, kind: input, shape index: {}]   ;;  %s3680_s1 = inlined_call_operand.vmem [shape: bf16[32,64], index: 1, kind: input, shape index: {}]   ;;  %s3681_s2 = inlined_call_operand.vmem [shape: f32[1,64], index: 2, kind: input, shape index: {}]   ;;  %s3682_s3 = inlined_call_operand.vmem [shape: bf16[64,64], index: 3, kind: input, shape index: {}]   ;;  %s3683_s4 = inlined_call_operand.vmem [shape: f32[1,64], index: 4, kind: input, shape index: {}]   ;;  %s3684_s5 = inlined_call_operand.vmem [shape: bf16[64,16], index: 5, kind: input, shape index: {}]   ;;  %s3685_s6 = inlined_call_operand.vmem [shape: f32[1,16], index: 6, kind: input, shape index: {}]   ;;  %s3686_s7 = inlined_call_operand.vmem [shape: bf16[1024,16], index: 7, kind: output, shape index: {}]  }
   0x1 LB: > { %s2398_s25 = sadd.s32 4294967295, %s3056_s24   ;;  %p2402_p0 = scmp.ge.s32.totalorder %s3056_s24, 1  ;;  %s3056_s24 = sphi %s3098_s24, %s17_s24  }
   0x2   : > { %p238_p1 = scmp.lt.s32.totalorder %s3056_s24, 3 }
   0x4   : > { %p239_p2 = pnand %p2402_p0, %p238_p1 }
   0x5   : > { %s2403_s28 = sshll.u32 (!%p239_p2), %s2398_s25, 6 }
   0x6   : > { %242 = sbr.rel (%p239_p2) target bundleno = 758 (0x2f6), region = 48  ;;  %p271_p3 = scmp.lt.s32.totalorder (!%p239_p2), %s2403_s28, 127 }
   0xb   : > { %v3008_v0 = vld [vmem:[%s3680_s1 + $0x8] sm:$0xff]   ;;  %v3009_v1 = vld [vmem:[%s3680_s1] sm:$0xff]   ;;  %s3688_s28 = smov (!%p271_p3, %s2403_s28), 127  ;;  %v3042_v2 = vld [vmem:[%s3682_s3 + $0x18] sm:$0xff]   ;;  %vm530_vm0 = vcmask 261120   ;;  %vm1051_vm1 = vcmask 523264  }
   0xc   : > { %2784 = vmatprep.subr.bf16.mxu0 %v3008_v0  ;;  %2996 = vmatprep.subr.bf16.mxu1 %v3008_v0  ;;  %s2404_s10 = sshll.u32 %s3688_s28, 2  ;;  %v3043_v11 = vld [vmem:[%s3682_s3 + $0x10] sm:$0xff]   ;;  %v3044_v14 = vld [vmem:[%s3682_s3 + $0x8] sm:$0xff]   ;;  %v3045_v19 = vld [vmem:[%s3682_s3] sm:$0xff]   ;;  %vm2277_vm2 = vcmask 125952  }
   0xd   : > { %2785 = vmatpush3.bf16.msra.mxu0 %v3008_v0  ;;  %2998 = vmatpush3.bf16.msra.mxu1 %v3008_v0  ;;  %s3123_s13 = scalar_lea.vmem %s3679_s0, %s2404_s10  ;;  %v3201_v40 = vld [vmem:[%s3681_s2] ss:$0 sm:$0xff]  ;;  %v3046_v46 = vld [vmem:[%s3684_s5 + $0x18] sm:$0xff]   ;;  %v3047_v47 = vld [vmem:[%s3684_s5 + $0x10] sm:$0xff]   ;;  %s3484_s16 = scalar_lea.vmem %s3686_s7, %s2404_s10 }
   0xe   : > { %2786 = vmatprep.subr.bf16.mxu0 %v3009_v1  ;;  %2997 = vmatprep.subr.bf16.mxu1 %v3009_v1  ;;  %v3010_v3 = vld [vmem:[%s3123_s13] sm:$0xff]   ;;  %v3011_v4 = vld [vmem:[%s3123_s13 + $0x8] sm:$0xff]   ;;  %v3012_v5 = vld [vmem:[%s3123_s13 + $0x10] sm:$0xff]  }
   0xf   : > { %2788 = vmatprep.mubr.msk.bf16.mxu0 %vm530_vm0, %v3010_v3  ;;  %v3013_v6 = vld [vmem:[%s3123_s13 + $0x18] sm:$0xff]   ;;  %v3014_v7 = vld [vmem:[%s3123_s13 + $0x20] sm:$0xff]   ;;  %v3015_v8 = vld [vmem:[%s3123_s13 + $0x28] sm:$0xff]  }
  0x10   : > { %v3016_v9 = vld [vmem:[%s3123_s13 + $0x30] sm:$0xff]   ;;  %v3026_v10 = vld [vmem:[%s3123_s13 + $0x80] sm:$0xff]   ;;  %v3027_v12 = vld [vmem:[%s3123_s13 + $0x88] sm:$0xff]  }
  0x11   : > { %2787 = vmatpush3.bf16.msra.mxu0 %v3009_v1  ;;  %2999 = vmatpush3.bf16.msra.mxu1 %v3009_v1  ;;  %v3028_v13 = vld [vmem:[%s3123_s13 + $0x90] sm:$0xff]   ;;  %v3017_v15 = vld [vmem:[%s3123_s13 + $0x38] sm:$0xff]   ;;  %v3018_v16 = vld [vmem:[%s3123_s13 + $0x40] sm:$0xff]  }
  0x12   : > { %2852 = vmatprep.subr.bf16.mxu1 %v3042_v2  ;;  %2820 = vmatprep.mubr.msk.bf16.mxu1 %vm530_vm0, %v3026_v10  ;;  %v3029_v17 = vld [vmem:[%s3123_s13 + $0x98] sm:$0xff]   ;;  %v3030_v18 = vld [vmem:[%s3123_s13 + $0xa0] sm:$0xff]   ;;  %v3019_v20 = vld [vmem:[%s3123_s13 + $0x48] sm:$0xff]  }
  0x13   : > { %v3020_v21 = vld [vmem:[%s3123_s13 + $0x50] sm:$0xff]   ;;  %v3031_v22 = vld [vmem:[%s3123_s13 + $0xa8] sm:$0xff]   ;;  %v3021_v24 = vld [vmem:[%s3123_s13 + $0x58] sm:$0xff]   ;;  %2924 = vmatprep.subr.bf16.mxu0 %v3046_v46 }
  0x14   : > { %2789 = vmatmul.mubr.msk.bf16.vlgmr.msra.gmra.mxu0 %vm530_vm0, %v3011_v4  ;;  %2821 = vmatmul.mubr.msk.bf16.vlgmr.msra.gmra.mxu1 %vm530_vm0, %v3027_v12  ;;  %v3032_v23 = vld [vmem:[%s3123_s13 + $0xb0] sm:$0xff]   ;;  %v3033_v25 = vld [vmem:[%s3123_s13 + $0xb8] sm:$0xff]   ;;  %v3022_v26 = vld [vmem:[%s3123_s13 + $0x60] sm:$0xff]  }
  0x15   : > { %2792 = vmatprep.mubr.msk.bf16.mxu0 %vm530_vm0, %v3012_v5  ;;  %2824 = vmatprep.mubr.msk.bf16.mxu1 %vm530_vm0, %v3028_v13  ;;  %v3034_v27 = vld [vmem:[%s3123_s13 + $0xc0] sm:$0xff]   ;;  %v3023_v28 = vld [vmem:[%s3123_s13 + $0x68] sm:$0xff]   ;;  %v3024_v30 = vld [vmem:[%s3123_s13 + $0x70] sm:$0xff]  }
  0x16   : > { %2853 = vmatpush3.bf16.msra.mxu1 %v3042_v2  ;;  %v3035_v29 = vld [vmem:[%s3123_s13 + $0xc8] sm:$0xff]   ;;  %v3036_v31 = vld [vmem:[%s3123_s13 + $0xd0] sm:$0xff]   ;;  %v3025_v32 = vld [vmem:[%s3123_s13 + $0x78] sm:$0xff]   ;;  %2925 = vmatpush3.bf16.msra.mxu0 %v3046_v46 }
  0x17   : > { %2854 = vmatprep.subr.bf16.mxu1 %v3043_v11  ;;  %v3037_v33 = vld [vmem:[%s3123_s13 + $0xd8] sm:$0xff]   ;;  %v3038_v34 = vld [vmem:[%s3123_s13 + $0xe0] sm:$0xff]   ;;  %v3039_v35 = vld [vmem:[%s3123_s13 + $0xe8] sm:$0xff]   ;;  %2926 = vmatprep.subr.bf16.mxu0 %v3047_v47 }
  0x18   : > { %v3040_v36 = vld [vmem:[%s3123_s13 + $0xf0] sm:$0xff]   ;;  %v3041_v37 = vld [vmem:[%s3123_s13 + $0xf8] sm:$0xff]   ;;  %v3048_v55 = vld [vmem:[%s3684_s5 + $0x8] sm:$0xff]  }
  0x19   : > { %v3049_v63 = vld [vmem:[%s3684_s5] sm:$0xff]  }
  0x1a   : > { %2855 = vmatpush3.bf16.msra.mxu1 %v3043_v11  ;;  %2927 = vmatpush3.bf16.msra.mxu0 %v3047_v47 }
  0x1b   : > { %2856 = vmatprep.subr.bf16.mxu1 %v3044_v14  ;;  %2928 = vmatprep.subr.bf16.mxu0 %v3048_v55 }
  0x1c   : > { %2793 = vmatmul.mubr.msk.bf16.gmra.mxu0 %vm530_vm0, %v3013_v6  ;;  %2825 = vmatmul.mubr.msk.bf16.gmra.mxu1 %vm530_vm0, %v3029_v17 }
  0x1d   : > { %2796 = vmatprep.mubr.msk.bf16.mxu0 %vm530_vm0, %v3014_v7  ;;  %2828 = vmatprep.mubr.msk.bf16.mxu1 %vm530_vm0, %v3030_v18 }
  0x1e   : > { %2857 = vmatpush3.bf16.msra.mxu1 %v3044_v14  ;;  %2929 = vmatpush3.bf16.msra.mxu0 %v3048_v55 }
  0x1f   : > { %2858 = vmatprep.subr.bf16.mxu1 %v3045_v19  ;;  %2930 = vmatprep.subr.bf16.mxu0 %v3049_v63 }
  0x22   : > { %2859 = vmatpush3.bf16.msra.mxu1 %v3045_v19  ;;  %2931 = vmatpush3.bf16.msra.mxu0 %v3049_v63 }
  0x24   : > { %2797 = vmatmul.mubr.msk.bf16.gmra.mxu0 %vm530_vm0, %v3015_v8  ;;  %2829 = vmatmul.mubr.msk.bf16.gmra.mxu1 %vm530_vm0, %v3031_v22 }
  0x25   : > { %2800 = vmatprep.mubr.msk.bf16.mxu0 %vm530_vm0, %v3016_v9  ;;  %2832 = vmatprep.mubr.msk.bf16.mxu1 %vm530_vm0, %v3032_v23 }
  0x2c   : > { %2801 = vmatmul.mubr.msk.bf16.gmra.mxu0 %vm530_vm0, %v3017_v15  ;;  %2833 = vmatmul.mubr.msk.bf16.gmra.mxu1 %vm530_vm0, %v3033_v25 }
  0x2d   : > { %2804 = vmatprep.mubr.msk.bf16.mxu0 %vm530_vm0, %v3018_v16  ;;  %2836 = vmatprep.mubr.msk.bf16.mxu1 %vm530_vm0, %v3034_v27 }
  0x34   : > { %2805 = vmatmul.mubr.msk.bf16.gmra.mxu0 %vm530_vm0, %v3019_v20  ;;  %2837 = vmatmul.mubr.msk.bf16.gmra.mxu1 %vm530_vm0, %v3035_v29 }
  0x35   : > { %2808 = vmatprep.mubr.msk.bf16.mxu0 %vm530_vm0, %v3020_v21  ;;  %2840 = vmatprep.mubr.msk.bf16.mxu1 %vm530_vm0, %v3036_v31 }
  0x3c   : > { %2809 = vmatmul.mubr.msk.bf16.gmra.mxu0 %vm530_vm0, %v3021_v24  ;;  %2841 = vmatmul.mubr.msk.bf16.gmra.mxu1 %vm530_vm0, %v3037_v33 }
  0x3d   : > { %2812 = vmatprep.mubr.msk.bf16.mxu0 %vm530_vm0, %v3022_v26  ;;  %2844 = vmatprep.mubr.msk.bf16.mxu1 %vm530_vm0, %v3038_v34 }
  0x44   : > { %2813 = vmatmul.mubr.msk.bf16.gmra.mxu0 %vm530_vm0, %v3023_v28  ;;  %2845 = vmatmul.mubr.msk.bf16.gmra.mxu1 %vm530_vm0, %v3039_v35 }
  0x45   : > { %2816 = vmatprep.mubr.msk.bf16.mxu0 %vm530_vm0, %v3024_v30  ;;  %2848 = vmatprep.mubr.msk.bf16.mxu1 %vm530_vm0, %v3040_v36 }
  0x4c   : > { %2817 = vmatmul.mubr.msk.bf16.gmra.mxu0 %vm530_vm0, %v3025_v32  ;;  %2849 = vmatmul.mubr.msk.bf16.gmra.mxu1 %vm530_vm0, %v3041_v37 }
  0xd4   : > { %v2790_v38 = vpop.f32.mrf.mxu0  ;;  %v3225_v3 = vpop.f32.mrf.mxu1 }
  0xd5   : > { %v670_v44 = vadd.f32 %v2790_v38, %v3201_v40 }
  0xd6   : > { %v661_v39 = vpop.f32.mrf.mxu0  ;;  %v3227_v8 = vpop.f32.mrf.mxu1 }
  0xd7   : > { %v662_v42 = vadd.f32 %v3201_v40, %v661_v39  ;;  %v918_v53 = vmax.f32 %v670_v44, 0.0 }
  0xd8   : > { %v2791_v41 = vpop.f32.mrf.mxu0  ;;  %v3229_v12 = vpop.f32.mrf.mxu1 }
  0xd9   : > { %v673_v43 = vadd.f32 %v2791_v41, %v3201_v40  ;;  %v916_v51 = vmax.f32 %v662_v42, 0.0 }
  0xda   : > { %v664_v45 = vpop.f32.mrf.mxu0  ;;  %v3236_v17 = vpop.f32.mrf.mxu1 }
  0xdb   : > { %v665_v48 = vadd.f32 %v3201_v40, %v664_v45  ;;  %v919_v49 = vmax.f32 %v673_v43, 0.0 }
  0xdc   : > { %v2794_v50 = vpop.f32.mrf.mxu0  ;;  %v3239_v21 = vpop.f32.mrf.mxu1 }
  0xdd   : > { %v917_v52 = vmax.f32 %v665_v48, 0.0  ;;  %v990_v57 = vpack.c.bf16 %v919_v49, %v918_v53  ;;  %v686_v61 = vadd.f32 %v2794_v50, %v3201_v40 }
  0xde   : > { %v677_v54 = vpop.f32.mrf.mxu0  ;;  %v3241_v26 = vpop.f32.mrf.mxu1 }
  0xdf   : > { %v989_v56 = vpack.c.bf16 %v917_v52, %v916_v51  ;;  %v678_v59 = vadd.f32 %v3201_v40, %v677_v54  ;;  %v922_v6 = vmax.f32 %v686_v61, 0.0 }
  0xe0   : > { %v2795_v58 = vpop.f32.mrf.mxu0  ;;  %v3243_v30 = vpop.f32.mrf.mxu1 }
  0xe1   : > { %v689_v60 = vadd.f32 %v2795_v58, %v3201_v40  ;;  %2860 = vmatprep.mubr.msk.bf16.mxu1 %vm1051_vm1, %v989_v56  ;;  %v920_v4 = vmax.f32 %v678_v59, 0.0 }
  0xe2   : > { %v680_v62 = vpop.f32.mrf.mxu0  ;;  %2861 = vmatmul.mubr.msk.bf16.vlgmr.msra.gmra.mxu1 %vm1051_vm1, %v990_v57  ;;  %v3250_v35 = vpop.f32.mrf.mxu1 }
  0xe3   : > { %v681_v0 = vadd.f32 %v3201_v40, %v680_v62  ;;  %v923_v1 = vmax.f32 %v689_v60, 0.0 }
  0xe4   : > { %v2798_v2 = vpop.f32.mrf.mxu0  ;;  %v3253_v39 = vpop.f32.mrf.mxu1 }
  0xe5   : > { %v921_v5 = vmax.f32 %v681_v0, 0.0  ;;  %v992_v10 = vpack.c.bf16 %v923_v1, %v922_v6  ;;  %v702_v15 = vadd.f32 %v2798_v2, %v3201_v40 }
  0xe6   : > { %v693_v7 = vpop.f32.mrf.mxu0  ;;  %v3255_v45 = vpop.f32.mrf.mxu1 }
  0xe7   : > { %v991_v9 = vpack.c.bf16 %v921_v5, %v920_v4  ;;  %v694_v13 = vadd.f32 %v3201_v40, %v693_v7  ;;  %v926_v24 = vmax.f32 %v702_v15, 0.0 }
  0xe8   : > { %v2799_v11 = vpop.f32.mrf.mxu0  ;;  %v3257_v49 = vpop.f32.mrf.mxu1 }
  0xe9   : > { %v705_v14 = vadd.f32 %v2799_v11, %v3201_v40  ;;  %2864 = vmatprep.mubr.msk.bf16.mxu1 %vm1051_vm1, %v991_v9  ;;  %v924_v22 = vmax.f32 %v694_v13, 0.0 }
  0xea   : > { %v696_v16 = vpop.f32.mrf.mxu0  ;;  %2865 = vmatmul.mubr.msk.bf16.gmra.mxu1 %vm1051_vm1, %v992_v10  ;;  %v3264_v54 = vpop.f32.mrf.mxu1 }
  0xeb   : > { %v697_v18 = vadd.f32 %v3201_v40, %v696_v16  ;;  %v927_v19 = vmax.f32 %v705_v14, 0.0 }
  0xec   : > { %v2802_v20 = vpop.f32.mrf.mxu0  ;;  %v3267_v58 = vpop.f32.mrf.mxu1 }
  0xed   : > { %v925_v23 = vmax.f32 %v697_v18, 0.0  ;;  %v994_v28 = vpack.c.bf16 %v927_v19, %v926_v24  ;;  %v718_v33 = vadd.f32 %v2802_v20, %v3201_v40 }
  0xee   : > { %v709_v25 = vpop.f32.mrf.mxu0  ;;  %v3269_v63 = vpop.f32.mrf.mxu1 }
  0xef   : > { %v993_v27 = vpack.c.bf16 %v925_v23, %v924_v22  ;;  %v710_v31 = vadd.f32 %v3201_v40, %v709_v25  ;;  %v930_v43 = vmax.f32 %v718_v33, 0.0 }
  0xf0   : > { %v2803_v29 = vpop.f32.mrf.mxu0  ;;  %v3271_v4 = vpop.f32.mrf.mxu1 }
  0xf1   : > { %v721_v32 = vadd.f32 %v2803_v29, %v3201_v40  ;;  %2868 = vmatprep.mubr.msk.bf16.mxu1 %vm1051_vm1, %v993_v27  ;;  %v928_v41 = vmax.f32 %v710_v31, 0.0 }
  0xf2   : > { %v712_v34 = vpop.f32.mrf.mxu0  ;;  %2869 = vmatmul.mubr.msk.bf16.gmra.mxu1 %vm1051_vm1, %v994_v28  ;;  %v3279_v14 = vpop.f32.mrf.mxu1 }
  0xf3   : > { %v713_v36 = vadd.f32 %v3201_v40, %v712_v34  ;;  %v931_v37 = vmax.f32 %v721_v32, 0.0 }
  0xf4   : > { %v2806_v38 = vpop.f32.mrf.mxu0  ;;  %v3281_v24 = vpop.f32.mrf.mxu1 }
  0xf5   : > { %v929_v42 = vmax.f32 %v713_v36, 0.0  ;;  %v996_v47 = vpack.c.bf16 %v931_v37, %v930_v43  ;;  %v734_v52 = vadd.f32 %v2806_v38, %v3201_v40  ;;  %v790_v43 = vadd.f32 %v3201_v40, %v3227_v8 }
  0xf6   : > { %v725_v44 = vpop.f32.mrf.mxu0  ;;  %v3289_v34 = vpop.f32.mrf.mxu1 }
  0xf7   : > { %v995_v46 = vpack.c.bf16 %v929_v42, %v928_v41  ;;  %v726_v50 = vadd.f32 %v3201_v40, %v725_v44  ;;  %v934_v61 = vmax.f32 %v734_v52, 0.0  ;;  %v793_v44 = vadd.f32 %v3201_v40, %v3236_v17 }
  0xf8   : > { %v2807_v48 = vpop.f32.mrf.mxu0 }
  0xf9   : > { %v737_v51 = vadd.f32 %v2807_v48, %v3201_v40  ;;  %2872 = vmatprep.mubr.msk.bf16.mxu1 %vm1051_vm1, %v995_v46  ;;  %v932_v59 = vmax.f32 %v726_v50, 0.0  ;;  %v3295_v48 = vpop.f32.mrf.mxu1 }
  0xfa   : > { %v728_v53 = vpop.f32.mrf.mxu0  ;;  %2873 = vmatmul.mubr.msk.bf16.gmra.mxu1 %vm1051_vm1, %v996_v47 }
  0xfb   : > { %v729_v55 = vadd.f32 %v3201_v40, %v728_v53  ;;  %v935_v56 = vmax.f32 %v737_v51, 0.0 }
  0xfc   : > { %v2810_v57 = vpop.f32.mrf.mxu0 }
  0xfd   : > { %v933_v60 = vmax.f32 %v729_v55, 0.0  ;;  %v998_v1 = vpack.c.bf16 %v935_v56, %v934_v61  ;;  %v750_v7 = vadd.f32 %v2810_v57, %v3201_v40  ;;  %v948_v55 = vmax.f32 %v790_v43, 0.0  ;;  %v856_v57 = vpop.f32.mrf.mxu1 }
  0xfe   : > { %v741_v62 = vpop.f32.mrf.mxu0  ;;  %v949_v56 = vmax.f32 %v793_v44, 0.0  ;;  %v849_v43 = vadd.f32 %v3271_v4, %v3201_v40  ;;  %v865_v4 = vadd.f32 %v3295_v48, %v3201_v40 }
  0xff   : > { %v997_v0 = vpack.c.bf16 %v933_v60, %v932_v59  ;;  %v742_v5 = vadd.f32 %v3201_v40, %v741_v62  ;;  %v938_v18 = vmax.f32 %v750_v7, 0.0  ;;  %v801_v7 = vadd.f32 %v3229_v12, %v3201_v40 }
 0x100   : > { %v2811_v2 = vpop.f32.mrf.mxu0  ;;  %v825_v12 = vadd.f32 %v3201_v40, %v3264_v54  ;;  %v838_v54 = vadd.f32 %v3201_v40, %v3269_v63 }
 0x101   : > { %v753_v6 = vadd.f32 %v2811_v2, %v3201_v40  ;;  %2876 = vmatprep.mubr.msk.bf16.mxu1 %vm1051_vm1, %v997_v0  ;;  %v936_v15 = vmax.f32 %v742_v5, 0.0  ;;  %v1005_v0 = vpack.c.bf16 %v949_v56, %v948_v55  ;;  %v809_v2 = vadd.f32 %v3201_v40, %v3250_v35 }
 0x102   : > { %v744_v9 = vpop.f32.mrf.mxu0  ;;  %2877 = vmatmul.mubr.msk.bf16.gmra.mxu1 %vm1051_vm1, %v998_v1  ;;  %v806_v1 = vadd.f32 %v3201_v40, %v3241_v26  ;;  %v798_v5 = vadd.f32 %v3225_v3, %v3201_v40  ;;  %v822_v3 = vadd.f32 %v3201_v40, %v3255_v45 }
 0x103   : > { %v745_v10 = vadd.f32 %v3201_v40, %v744_v9  ;;  %v939_v11 = vmax.f32 %v753_v6, 0.0  ;;  %v3311_v9 = vpop.f32.mrf.mxu1  ;;  %v953_v26 = vmax.f32 %v809_v2, 0.0 }
 0x104   : > { %v2814_v13 = vpop.f32.mrf.mxu0 }
 0x105   : > { %v937_v16 = vmax.f32 %v745_v10, 0.0  ;;  %v1000_v22 = vpack.c.bf16 %v939_v11, %v938_v18  ;;  %v766_v28 = vadd.f32 %v2814_v13, %v3201_v40  ;;  %v952_v10 = vmax.f32 %v806_v1, 0.0  ;;  %v869_v35 = vpop.f32.mrf.mxu1 }
 0x106   : > { %v757_v19 = vpop.f32.mrf.mxu0  ;;  %v950_v11 = vmax.f32 %v798_v5, 0.0  ;;  %v951_v13 = vmax.f32 %v801_v7, 0.0  ;;  %v814_v18 = vadd.f32 %v3239_v21, %v3201_v40  ;;  %v841_v21 = vadd.f32 %v3201_v40, %v3279_v14 }
 0x107   : > { %v999_v20 = vpack.c.bf16 %v937_v16, %v936_v15  ;;  %v758_v25 = vadd.f32 %v3201_v40, %v757_v19  ;;  %v942_v38 = vmax.f32 %v766_v28, 0.0  ;;  %v1007_v15 = vpack.c.bf16 %v953_v26, %v952_v10 }
 0x108   : > { %v2815_v23 = vpop.f32.mrf.mxu0  ;;  %v1006_v16 = vpack.c.bf16 %v951_v13, %v950_v11  ;;  %v817_v19 = vadd.f32 %v3243_v30, %v3201_v40  ;;  %v830_v30 = vadd.f32 %v3253_v39, %v3201_v40  ;;  %v854_v14 = vadd.f32 %v3201_v40, %v3289_v34 }
 0x109   : > { %v769_v27 = vadd.f32 %v2815_v23, %v3201_v40  ;;  %2880 = vmatprep.mubr.msk.bf16.mxu1 %vm1051_vm1, %v999_v20  ;;  %v940_v36 = vmax.f32 %v758_v25, 0.0  ;;  %v2843_v20 = vpop.f32.mrf.mxu1  ;;  %v957_v23 = vmax.f32 %v825_v12, 0.0  ;;  %v954_v25 = vmax.f32 %v814_v18, 0.0 }
 0x10a   : > { %v760_v29 = vpop.f32.mrf.mxu0  ;;  %2881 = vmatmul.mubr.msk.bf16.gmra.mxu1 %vm1051_vm1, %v1000_v22  ;;  %v956_v22 = vmax.f32 %v822_v3, 0.0  ;;  %v881_v48 = vadd.f32 %v2843_v20, %v3201_v40 }
 0x10b   : > { %v761_v31 = vadd.f32 %v3201_v40, %v760_v29  ;;  %v943_v32 = vmax.f32 %v769_v27, 0.0  ;;  %v955_v27 = vmax.f32 %v817_v19, 0.0  ;;  %v872_v45 = vpop.f32.mrf.mxu1 }
 0x10c   : > { %v2818_v33 = vpop.f32.mrf.mxu0  ;;  %v1009_v28 = vpack.c.bf16 %v957_v23, %v956_v22  ;;  %v873_v55 = vadd.f32 %v3201_v40, %v872_v45  ;;  %v971_v26 = vmax.f32 %v881_v48, 0.0 }
 0x10d   : > { %v941_v37 = vmax.f32 %v761_v31, 0.0  ;;  %v1002_v46 = vpack.c.bf16 %v943_v32, %v942_v38  ;;  %v782_v52 = vadd.f32 %v2818_v33, %v3201_v40  ;;  %v1008_v29 = vpack.c.bf16 %v955_v27, %v954_v25  ;;  %v2846_v32 = vpop.f32.mrf.mxu1 }
 0x10e   : > { %v773_v41 = vpop.f32.mrf.mxu0  ;;  %v833_v31 = vadd.f32 %v3257_v49, %v3201_v40  ;;  %v960_v33 = vmax.f32 %v838_v54, 0.0  ;;  %v846_v49 = vadd.f32 %v3267_v58, %v3201_v40  ;;  %v862_v58 = vadd.f32 %v3281_v24, %v3201_v40 }
 0x10f   : > { %v1001_v42 = vpack.c.bf16 %v941_v37, %v940_v36  ;;  %v774_v50 = vadd.f32 %v3201_v40, %v773_v41  ;;  %v946_v61 = vmax.f32 %v782_v52, 0.0  ;;  %v961_v36 = vmax.f32 %v841_v21, 0.0  ;;  %v885_v63 = vpop.f32.mrf.mxu1 }
 0x110   : > { %v2819_v47 = vpop.f32.mrf.mxu0  ;;  %v958_v37 = vmax.f32 %v830_v30, 0.0  ;;  %v959_v38 = vmax.f32 %v833_v31, 0.0  ;;  %v878_v24 = vadd.f32 %v3311_v9, %v3201_v40  ;;  %v894_v9 = vadd.f32 %v2846_v32, %v3201_v40  ;;  %v3374_v30 = vld [vmem:[%s3683_s4] ss:$0 sm:$0xff] }
 0x111   : > { %v785_v51 = vadd.f32 %v2819_v47, %v3201_v40  ;;  %2884 = vmatprep.mubr.msk.bf16.mxu1 %vm1051_vm1, %v1001_v42  ;;  %v944_v59 = vmax.f32 %v774_v50, 0.0  ;;  %v1011_v41 = vpack.c.bf16 %v961_v36, %v960_v33  ;;  %v857_v42 = vadd.f32 %v3201_v40, %v856_v57  ;;  %v2847_v44 = vpop.f32.mrf.mxu1 }
 0x112   : > { %v776_v53 = vpop.f32.mrf.mxu0  ;;  %2885 = vmatmul.mubr.msk.bf16.gmra.mxu1 %vm1051_vm1, %v1002_v46  ;;  %v1010_v39 = vpack.c.bf16 %v959_v38, %v958_v37  ;;  %v964_v46 = vmax.f32 %v854_v14, 0.0  ;;  %v962_v50 = vmax.f32 %v846_v49, 0.0  ;;  %v969_v57 = vmax.f32 %v873_v55, 0.0 }
 0x113   : > { %v777_v8 = vadd.f32 %v3201_v40, %v776_v53  ;;  %v947_v17 = vmax.f32 %v785_v51, 0.0  ;;  %v965_v47 = vmax.f32 %v857_v42, 0.0  ;;  %v963_v51 = vmax.f32 %v849_v43, 0.0  ;;  %v888_v52 = vpop.f32.mrf.mxu1 }
 0x114   : > { %v870_v53 = vadd.f32 %v3201_v40, %v869_v35  ;;  %v889_v1 = vadd.f32 %v3201_v40, %v888_v52  ;;  %v970_v10 = vmax.f32 %v878_v24, 0.0  ;;  %v897_v12 = vadd.f32 %v2847_v44, %v3201_v40 }
 0x115   : > { %v945_v60 = vmax.f32 %v777_v8, 0.0  ;;  %v1004_v6 = vpack.c.bf16 %v947_v17, %v946_v61  ;;  %v1013_v34 = vpack.c.bf16 %v965_v47, %v964_v46  ;;  %v1012_v8 = vpack.c.bf16 %v963_v51, %v962_v50  ;;  %v2850_v56 = vpop.f32.mrf.mxu1 }
 0x116   : > { %v968_v17 = vmax.f32 %v870_v53, 0.0  ;;  %v973_v7 = vmax.f32 %v889_v1, 0.0  ;;  %v1016_v3 = vpack.c.bf16 %v971_v26, %v970_v10  ;;  %v974_v19 = vmax.f32 %v894_v9, 0.0 }
 0x117   : > { %v1003_v62 = vpack.c.bf16 %v945_v60, %v944_v59  ;;  %v966_v59 = vmax.f32 %v862_v58, 0.0  ;;  %v967_v60 = vmax.f32 %v865_v4, 0.0  ;;  %v901_v61 = vpop.f32.mrf.mxu1  ;;  %v975_v20 = vmax.f32 %v897_v12, 0.0 }
 0x118   : > { %v902_v35 = vadd.f32 %v3201_v40, %v901_v61  ;;  %v910_v25 = vadd.f32 %v2850_v56, %v3201_v40 }
 0x119   : > { %2888 = vmatprep.mubr.msk.bf16.mxu1 %vm1051_vm1, %v1003_v62  ;;  %v1015_v62 = vpack.c.bf16 %v969_v57, %v968_v17  ;;  %v1014_v2 = vpack.c.bf16 %v967_v60, %v966_v59  ;;  %v2851_v5 = vpop.f32.mrf.mxu1  ;;  %v1018_v23 = vpack.c.bf16 %v975_v20, %v974_v19 }
 0x11a   : > { %2889 = vmatmul.mubr.msk.bf16.gmra.mxu1 %vm1051_vm1, %v1004_v6  ;;  %v913_v27 = vadd.f32 %v2851_v5, %v3201_v40  ;;  %v978_v45 = vmax.f32 %v910_v25, 0.0 }
 0x11b   : > { %2892 = vmatprep.mubr.msk.bf16.mxu1 %vm1051_vm1, %v1005_v0  ;;  %v886_v0 = vadd.f32 %v3201_v40, %v885_v63  ;;  %v904_v11 = vpop.f32.mrf.mxu1 }
 0x11d   : > { %v972_v6 = vmax.f32 %v886_v0, 0.0 }
 0x11f   : > { %v1017_v13 = vpack.c.bf16 %v973_v7, %v972_v6 }
 0x122   : > { %2893 = vmatmul.mubr.msk.bf16.gmra.mxu1 %vm1051_vm1, %v1006_v16  ;;  %v976_v16 = vmax.f32 %v902_v35, 0.0 }
 0x123   : > { %2896 = vmatprep.mubr.msk.bf16.mxu1 %vm1051_vm1, %v1007_v15  ;;  %v905_v15 = vadd.f32 %v3201_v40, %v904_v11 }
 0x125   : > { %v977_v18 = vmax.f32 %v905_v15, 0.0 }
 0x127   : > { %v1019_v22 = vpack.c.bf16 %v977_v18, %v976_v16 }
 0x12a   : > { %2897 = vmatmul.mubr.msk.bf16.gmra.mxu1 %vm1051_vm1, %v1008_v29 }
 0x12b   : > { %2900 = vmatprep.mubr.msk.bf16.mxu1 %vm1051_vm1, %v1009_v28  ;;  %v979_v28 = vmax.f32 %v913_v27, 0.0 }
 0x12d   : > { %v1020_v54 = vpack.c.bf16 %v979_v28, %v978_v45 }
 0x132   : > { %2901 = vmatmul.mubr.msk.bf16.gmra.mxu1 %vm1051_vm1, %v1010_v39 }
 0x133   : > { %2904 = vmatprep.mubr.msk.bf16.mxu1 %vm1051_vm1, %v1011_v41 }
 0x13a   : > { %2905 = vmatmul.mubr.msk.bf16.gmra.mxu1 %vm1051_vm1, %v1012_v8 }
 0x13b   : > { %2908 = vmatprep.mubr.msk.bf16.mxu1 %vm1051_vm1, %v1013_v34 }
 0x142   : > { %2909 = vmatmul.mubr.msk.bf16.gmra.mxu1 %vm1051_vm1, %v1014_v2 }
 0x143   : > { %2912 = vmatprep.mubr.msk.bf16.mxu1 %vm1051_vm1, %v1015_v62 }
 0x14a   : > { %2913 = vmatmul.mubr.msk.bf16.gmra.mxu1 %vm1051_vm1, %v1016_v3 }
 0x14b   : > { %2916 = vmatprep.mubr.msk.bf16.mxu1 %vm1051_vm1, %v1017_v13 }
 0x152   : > { %2917 = vmatmul.mubr.msk.bf16.gmra.mxu1 %vm1051_vm1, %v1018_v23 }
 0x153   : > { %2920 = vmatprep.mubr.msk.bf16.mxu1 %vm1051_vm1, %v1019_v22 }
 0x15a   : > { %2921 = vmatmul.mubr.msk.bf16.gmra.mxu1 %vm1051_vm1, %v1020_v54 }
 0x1a2   : > { %v2862_v21 = vpop.f32.mrf.mxu1 }
 0x1a3   : > { %v1191_v33 = vadd.f32 %v2862_v21, %v3374_v30 }
 0x1a4   : > { %v1182_v29 = vpop.f32.mrf.mxu1 }
 0x1a5   : > { %v1183_v32 = vadd.f32 %v3374_v30, %v1182_v29  ;;  %v1439_v42 = vmax.f32 %v1191_v33, 0.0 }
 0x1a6   : > { %v2863_v31 = vpop.f32.mrf.mxu1 }
 0x1a7   : > { %v1194_v40 = vadd.f32 %v2863_v31, %v3374_v30  ;;  %v1437_v41 = vmax.f32 %v1183_v32, 0.0 }
 0x1a8   : > { %v1185_v36 = vpop.f32.mrf.mxu1 }
 0x1a9   : > { %v1186_v37 = vadd.f32 %v3374_v30, %v1185_v36  ;;  %v1440_v38 = vmax.f32 %v1194_v40, 0.0 }
 0x1aa   : > { %v2866_v63 = vpop.f32.mrf.mxu1 }
 0x1ab   : > { %v1438_v14 = vmax.f32 %v1186_v37, 0.0  ;;  %v1511_v43 = vpack.c.bf16 %v1440_v38, %v1439_v42  ;;  %v1207_v50 = vadd.f32 %v2866_v63, %v3374_v30 }
 0x1ac   : > { %v1198_v39 = vpop.f32.mrf.mxu1 }
 0x1ad   : > { %v1510_v49 = vpack.c.bf16 %v1438_v14, %v1437_v41  ;;  %v1199_v46 = vadd.f32 %v3374_v30, %v1198_v39  ;;  %v1443_v58 = vmax.f32 %v1207_v50, 0.0 }
 0x1ae   : > { %v2867_v44 = vpop.f32.mrf.mxu1 }
 0x1af   : > { %v1210_v47 = vadd.f32 %v2867_v44, %v3374_v30  ;;  %2932 = vmatprep.mubr.msk.bf16.mxu0 %vm1051_vm1, %v1510_v49  ;;  %v1441_v55 = vmax.f32 %v1199_v46, 0.0 }
 0x1b0   : > { %v1201_v51 = vpop.f32.mrf.mxu1  ;;  %2933 = vmatmul.mubr.msk.bf16.vlgmr.msra.gmra.mxu0 %vm1051_vm1, %v1511_v43 }
 0x1b1   : > { %v1202_v52 = vadd.f32 %v3374_v30, %v1201_v51  ;;  %v1444_v34 = vmax.f32 %v1210_v47, 0.0 }
 0x1b2   : > { %v2870_v53 = vpop.f32.mrf.mxu1 }
 0x1b3   : > { %v1442_v8 = vmax.f32 %v1202_v52, 0.0  ;;  %v1513_v17 = vpack.c.bf16 %v1444_v34, %v1443_v58  ;;  %v1223_v61 = vadd.f32 %v2870_v53, %v3374_v30 }
 0x1b4   : > { %v1214_v4 = vpop.f32.mrf.mxu1 }
 0x1b5   : > { %v1512_v56 = vpack.c.bf16 %v1442_v8, %v1441_v55  ;;  %v1215_v59 = vadd.f32 %v3374_v30, %v1214_v4  ;;  %v1447_v5 = vmax.f32 %v1223_v61, 0.0 }
 0x1b6   : > { %v2871_v57 = vpop.f32.mrf.mxu1 }
 0x1b7   : > { %v1226_v60 = vadd.f32 %v2871_v57, %v3374_v30  ;;  %2936 = vmatprep.mubr.msk.bf16.mxu0 %vm1051_vm1, %v1512_v56  ;;  %v1445_v24 = vmax.f32 %v1215_v59, 0.0 }
 0x1b8   : > { %v1217_v62 = vpop.f32.mrf.mxu1  ;;  %2937 = vmatmul.mubr.msk.bf16.gmra.mxu0 %vm1051_vm1, %v1513_v17 }
 0x1b9   : > { %v1218_v0 = vadd.f32 %v3374_v30, %v1217_v62  ;;  %v1448_v1 = vmax.f32 %v1226_v60, 0.0 }
 0x1ba   : > { %v2874_v2 = vpop.f32.mrf.mxu1 }
 0x1bb   : > { %v1446_v48 = vmax.f32 %v1218_v0, 0.0  ;;  %v1515_v10 = vpack.c.bf16 %v1448_v1, %v1447_v5  ;;  %v1239_v35 = vadd.f32 %v2874_v2, %v3374_v30 }
 0x1bc   : > { %v1230_v6 = vpop.f32.mrf.mxu1 }
 0x1bd   : > { %v1514_v7 = vpack.c.bf16 %v1446_v48, %v1445_v24  ;;  %v1231_v11 = vadd.f32 %v3374_v30, %v1230_v6  ;;  %v1451_v19 = vmax.f32 %v1239_v35, 0.0 }
 0x1be   : > { %v2875_v26 = vpop.f32.mrf.mxu1 }
 0x1bf   : > { %v1242_v13 = vadd.f32 %v2875_v26, %v3374_v30  ;;  %2940 = vmatprep.mubr.msk.bf16.mxu0 %vm1051_vm1, %v1514_v7  ;;  %v1449_v16 = vmax.f32 %v1231_v11, 0.0 }
 0x1c0   : > { %v1233_v15 = vpop.f32.mrf.mxu1  ;;  %2941 = vmatmul.mubr.msk.bf16.gmra.mxu0 %vm1051_vm1, %v1515_v10 }
 0x1c1   : > { %v1234_v3 = vadd.f32 %v3374_v30, %v1233_v15  ;;  %v1452_v9 = vmax.f32 %v1242_v13, 0.0 }
 0x1c2   : > { %v2878_v12 = vpop.f32.mrf.mxu1 }
 0x1c3   : > { %v1450_v18 = vmax.f32 %v1234_v3, 0.0  ;;  %v1517_v23 = vpack.c.bf16 %v1452_v9, %v1451_v19  ;;  %v1255_v28 = vadd.f32 %v2878_v12, %v3374_v30 }
 0x1c4   : > { %v1246_v20 = vpop.f32.mrf.mxu1 }
 0x1c5   : > { %v1516_v22 = vpack.c.bf16 %v1450_v18, %v1449_v16  ;;  %v1247_v27 = vadd.f32 %v3374_v30, %v1246_v20  ;;  %v1455_v33 = vmax.f32 %v1255_v28, 0.0 }
 0x1c6   : > { %v2879_v25 = vpop.f32.mrf.mxu1 }
 0x1c7   : > { %v1258_v45 = vadd.f32 %v2879_v25, %v3374_v30  ;;  %2944 = vmatprep.mubr.msk.bf16.mxu0 %vm1051_vm1, %v1516_v22  ;;  %v1453_v32 = vmax.f32 %v1247_v27, 0.0 }
 0x1c8   : > { %v1249_v54 = vpop.f32.mrf.mxu1  ;;  %2945 = vmatmul.mubr.msk.bf16.gmra.mxu0 %vm1051_vm1, %v1517_v23 }
 0x1c9   : > { %v1250_v21 = vadd.f32 %v3374_v30, %v1249_v54  ;;  %v1456_v29 = vmax.f32 %v1258_v45, 0.0 }
 0x1ca   : > { %v2882_v31 = vpop.f32.mrf.mxu1 }
 0x1cb   : > { %v1454_v40 = vmax.f32 %v1250_v21, 0.0  ;;  %v1519_v38 = vpack.c.bf16 %v1456_v29, %v1455_v33  ;;  %v1271_v42 = vadd.f32 %v2882_v31, %v3374_v30 }
 0x1cc   : > { %v1262_v36 = vpop.f32.mrf.mxu1 }
 0x1cd   : > { %v1518_v37 = vpack.c.bf16 %v1454_v40, %v1453_v32  ;;  %v1263_v41 = vadd.f32 %v3374_v30, %v1262_v36  ;;  %v1459_v50 = vmax.f32 %v1271_v42, 0.0 }
 0x1ce   : > { %v2883_v63 = vpop.f32.mrf.mxu1 }
 0x1cf   : > { %v1274_v14 = vadd.f32 %v2883_v63, %v3374_v30  ;;  %2948 = vmatprep.mubr.msk.bf16.mxu0 %vm1051_vm1, %v1518_v37  ;;  %v1457_v46 = vmax.f32 %v1263_v41, 0.0 }
 0x1d0   : > { %v1265_v39 = vpop.f32.mrf.mxu1  ;;  %2949 = vmatmul.mubr.msk.bf16.gmra.mxu0 %vm1051_vm1, %v1519_v38 }
 0x1d1   : > { %v1266_v49 = vadd.f32 %v3374_v30, %v1265_v39  ;;  %v1460_v43 = vmax.f32 %v1274_v14, 0.0 }
 0x1d2   : > { %v2886_v44 = vpop.f32.mrf.mxu1 }
 0x1d3   : > { %v1458_v47 = vmax.f32 %v1266_v49, 0.0  ;;  %v1521_v34 = vpack.c.bf16 %v1460_v43, %v1459_v50  ;;  %v1287_v58 = vadd.f32 %v2886_v44, %v3374_v30 }
 0x1d4   : > { %v1278_v51 = vpop.f32.mrf.mxu1 }
 0x1d5   : > { %v1520_v52 = vpack.c.bf16 %v1458_v47, %v1457_v46  ;;  %v1279_v55 = vadd.f32 %v3374_v30, %v1278_v51  ;;  %v1463_v61 = vmax.f32 %v1287_v58, 0.0 }
 0x1d6   : > { %v2887_v53 = vpop.f32.mrf.mxu1 }
 0x1d7   : > { %v1290_v8 = vadd.f32 %v2887_v53, %v3374_v30  ;;  %2952 = vmatprep.mubr.msk.bf16.mxu0 %vm1051_vm1, %v1520_v52  ;;  %v1461_v59 = vmax.f32 %v1279_v55, 0.0 }
 0x1d8   : > { %v1281_v4 = vpop.f32.mrf.mxu1  ;;  %2953 = vmatmul.mubr.msk.bf16.gmra.mxu0 %vm1051_vm1, %v1521_v34 }
 0x1d9   : > { %v1282_v56 = vadd.f32 %v3374_v30, %v1281_v4  ;;  %v1464_v17 = vmax.f32 %v1290_v8, 0.0 }
 0x1da   : > { %v2890_v57 = vpop.f32.mrf.mxu1 }
 0x1db   : > { %v1462_v60 = vmax.f32 %v1282_v56, 0.0  ;;  %v1523_v1 = vpack.c.bf16 %v1464_v17, %v1463_v61  ;;  %v1303_v5 = vadd.f32 %v2890_v57, %v3374_v30 }
 0x1dc   : > { %v1294_v62 = vpop.f32.mrf.mxu1 }
 0x1dd   : > { %v1522_v0 = vpack.c.bf16 %v1462_v60, %v1461_v59  ;;  %v1295_v24 = vadd.f32 %v3374_v30, %v1294_v62  ;;  %v1467_v35 = vmax.f32 %v1303_v5, 0.0 }
 0x1de   : > { %v2891_v2 = vpop.f32.mrf.mxu1 }
 0x1df   : > { %v1306_v48 = vadd.f32 %v2891_v2, %v3374_v30  ;;  %2956 = vmatprep.mubr.msk.bf16.mxu0 %vm1051_vm1, %v1522_v0  ;;  %v1465_v11 = vmax.f32 %v1295_v24, 0.0 }
 0x1e0   : > { %v1297_v6 = vpop.f32.mrf.mxu1  ;;  %2957 = vmatmul.mubr.msk.bf16.gmra.mxu0 %vm1051_vm1, %v1523_v1 }
 0x1e1   : > { %v1298_v7 = vadd.f32 %v3374_v30, %v1297_v6  ;;  %v1468_v10 = vmax.f32 %v1306_v48, 0.0 }
 0x1e2   : > { %v2894_v26 = vpop.f32.mrf.mxu1 }
 0x1e3   : > { %v1466_v13 = vmax.f32 %v1298_v7, 0.0  ;;  %v1525_v9 = vpack.c.bf16 %v1468_v10, %v1467_v35  ;;  %v1319_v19 = vadd.f32 %v2894_v26, %v3374_v30 }
 0x1e4   : > { %v1310_v15 = vpop.f32.mrf.mxu1 }
 0x1e5   : > { %v1524_v3 = vpack.c.bf16 %v1466_v13, %v1465_v11  ;;  %v1311_v16 = vadd.f32 %v3374_v30, %v1310_v15  ;;  %v1471_v28 = vmax.f32 %v1319_v19, 0.0 }
 0x1e6   : > { %v2895_v12 = vpop.f32.mrf.mxu1 }
 0x1e7   : > { %v1322_v18 = vadd.f32 %v2895_v12, %v3374_v30  ;;  %2960 = vmatprep.mubr.msk.bf16.mxu0 %vm1051_vm1, %v1524_v3  ;;  %v1469_v27 = vmax.f32 %v1311_v16, 0.0 }
 0x1e8   : > { %v1313_v20 = vpop.f32.mrf.mxu1  ;;  %2961 = vmatmul.mubr.msk.bf16.gmra.mxu0 %vm1051_vm1, %v1525_v9 }
 0x1e9   : > { %v1314_v22 = vadd.f32 %v3374_v30, %v1313_v20  ;;  %v1472_v23 = vmax.f32 %v1322_v18, 0.0 }
 0x1ea   : > { %v2898_v25 = vpop.f32.mrf.mxu1 }
 0x1eb   : > { %v1470_v45 = vmax.f32 %v1314_v22, 0.0  ;;  %v1527_v29 = vpack.c.bf16 %v1472_v23, %v1471_v28  ;;  %v1335_v33 = vadd.f32 %v2898_v25, %v3374_v30 }
 0x1ec   : > { %v1326_v54 = vpop.f32.mrf.mxu1 }
 0x1ed   : > { %v1526_v21 = vpack.c.bf16 %v1470_v45, %v1469_v27  ;;  %v1327_v32 = vadd.f32 %v3374_v30, %v1326_v54  ;;  %v1475_v42 = vmax.f32 %v1335_v33, 0.0 }
 0x1ee   : > { %v2899_v31 = vpop.f32.mrf.mxu1 }
 0x1ef   : > { %v1338_v40 = vadd.f32 %v2899_v31, %v3374_v30  ;;  %2964 = vmatprep.mubr.msk.bf16.mxu0 %vm1051_vm1, %v1526_v21  ;;  %v1473_v41 = vmax.f32 %v1327_v32, 0.0 }
 0x1f0   : > { %v1329_v36 = vpop.f32.mrf.mxu1  ;;  %2965 = vmatmul.mubr.msk.bf16.gmra.mxu0 %vm1051_vm1, %v1527_v29 }
 0x1f1   : > { %v1330_v37 = vadd.f32 %v3374_v30, %v1329_v36  ;;  %v1476_v38 = vmax.f32 %v1338_v40, 0.0 }
 0x1f2   : > { %v2902_v63 = vpop.f32.mrf.mxu1 }
 0x1f3   : > { %v1474_v14 = vmax.f32 %v1330_v37, 0.0  ;;  %v1529_v43 = vpack.c.bf16 %v1476_v38, %v1475_v42  ;;  %v1351_v50 = vadd.f32 %v2902_v63, %v3374_v30 }
 0x1f4   : > { %v1342_v39 = vpop.f32.mrf.mxu1 }
 0x1f5   : > { %v1528_v49 = vpack.c.bf16 %v1474_v14, %v1473_v41  ;;  %v1343_v46 = vadd.f32 %v3374_v30, %v1342_v39  ;;  %v1479_v58 = vmax.f32 %v1351_v50, 0.0 }
 0x1f6   : > { %v2903_v44 = vpop.f32.mrf.mxu1 }
 0x1f7   : > { %v1354_v47 = vadd.f32 %v2903_v44, %v3374_v30  ;;  %2968 = vmatprep.mubr.msk.bf16.mxu0 %vm1051_vm1, %v1528_v49  ;;  %v1477_v55 = vmax.f32 %v1343_v46, 0.0 }
 0x1f8   : > { %v1345_v51 = vpop.f32.mrf.mxu1  ;;  %2969 = vmatmul.mubr.msk.bf16.gmra.mxu0 %vm1051_vm1, %v1529_v43 }
 0x1f9   : > { %v1346_v52 = vadd.f32 %v3374_v30, %v1345_v51  ;;  %v1480_v34 = vmax.f32 %v1354_v47, 0.0 }
 0x1fa   : > { %v2906_v53 = vpop.f32.mrf.mxu1 }
 0x1fb   : > { %v1478_v8 = vmax.f32 %v1346_v52, 0.0  ;;  %v1531_v17 = vpack.c.bf16 %v1480_v34, %v1479_v58  ;;  %v1367_v61 = vadd.f32 %v2906_v53, %v3374_v30 }
 0x1fc   : > { %v1358_v4 = vpop.f32.mrf.mxu1 }
 0x1fd   : > { %v1530_v56 = vpack.c.bf16 %v1478_v8, %v1477_v55  ;;  %v1359_v59 = vadd.f32 %v3374_v30, %v1358_v4  ;;  %v1483_v5 = vmax.f32 %v1367_v61, 0.0 }
 0x1fe   : > { %v2907_v57 = vpop.f32.mrf.mxu1 }
 0x1ff   : > { %v1370_v60 = vadd.f32 %v2907_v57, %v3374_v30  ;;  %2972 = vmatprep.mubr.msk.bf16.mxu0 %vm1051_vm1, %v1530_v56  ;;  %v1481_v24 = vmax.f32 %v1359_v59, 0.0 }
 0x200   : > { %v1361_v62 = vpop.f32.mrf.mxu1  ;;  %2973 = vmatmul.mubr.msk.bf16.gmra.mxu0 %vm1051_vm1, %v1531_v17 }
 0x201   : > { %v1362_v0 = vadd.f32 %v3374_v30, %v1361_v62  ;;  %v1484_v1 = vmax.f32 %v1370_v60, 0.0 }
 0x202   : > { %v2910_v2 = vpop.f32.mrf.mxu1 }
 0x203   : > { %v1482_v48 = vmax.f32 %v1362_v0, 0.0  ;;  %v1533_v10 = vpack.c.bf16 %v1484_v1, %v1483_v5  ;;  %v1383_v35 = vadd.f32 %v2910_v2, %v3374_v30  ;;  %v3475_v0 = vld [vmem:[%s3685_s6] ss:$0 sm:$0xff] }
 0x204   : > { %v1374_v6 = vpop.f32.mrf.mxu1 }
 0x205   : > { %v1532_v7 = vpack.c.bf16 %v1482_v48, %v1481_v24  ;;  %v1375_v11 = vadd.f32 %v3374_v30, %v1374_v6  ;;  %v1487_v19 = vmax.f32 %v1383_v35, 0.0 }
 0x206   : > { %v2911_v26 = vpop.f32.mrf.mxu1 }
 0x207   : > { %v1386_v13 = vadd.f32 %v2911_v26, %v3374_v30  ;;  %2976 = vmatprep.mubr.msk.bf16.mxu0 %vm1051_vm1, %v1532_v7  ;;  %v1485_v16 = vmax.f32 %v1375_v11, 0.0 }
 0x208   : > { %v1377_v15 = vpop.f32.mrf.mxu1  ;;  %2977 = vmatmul.mubr.msk.bf16.gmra.mxu0 %vm1051_vm1, %v1533_v10 }
 0x209   : > { %v1378_v3 = vadd.f32 %v3374_v30, %v1377_v15  ;;  %v1488_v9 = vmax.f32 %v1386_v13, 0.0 }
 0x20a   : > { %v2914_v12 = vpop.f32.mrf.mxu1 }
 0x20b   : > { %v1486_v18 = vmax.f32 %v1378_v3, 0.0  ;;  %v1535_v23 = vpack.c.bf16 %v1488_v9, %v1487_v19  ;;  %v1399_v28 = vadd.f32 %v2914_v12, %v3374_v30 }
 0x20c   : > { %v1390_v20 = vpop.f32.mrf.mxu1 }
 0x20d   : > { %v1534_v22 = vpack.c.bf16 %v1486_v18, %v1485_v16  ;;  %v1391_v27 = vadd.f32 %v3374_v30, %v1390_v20  ;;  %v1491_v33 = vmax.f32 %v1399_v28, 0.0 }
 0x20e   : > { %v2915_v25 = vpop.f32.mrf.mxu1 }
 0x20f   : > { %v1402_v45 = vadd.f32 %v2915_v25, %v3374_v30  ;;  %2980 = vmatprep.mubr.msk.bf16.mxu0 %vm1051_vm1, %v1534_v22  ;;  %v1489_v32 = vmax.f32 %v1391_v27, 0.0 }
 0x210   : > { %v1393_v54 = vpop.f32.mrf.mxu1  ;;  %2981 = vmatmul.mubr.msk.bf16.gmra.mxu0 %vm1051_vm1, %v1535_v23 }
 0x211   : > { %v1394_v21 = vadd.f32 %v3374_v30, %v1393_v54  ;;  %v1492_v29 = vmax.f32 %v1402_v45, 0.0 }
 0x212   : > { %v2918_v31 = vpop.f32.mrf.mxu1 }
 0x213   : > { %v1490_v40 = vmax.f32 %v1394_v21, 0.0  ;;  %v1537_v38 = vpack.c.bf16 %v1492_v29, %v1491_v33  ;;  %v1415_v42 = vadd.f32 %v2918_v31, %v3374_v30 }
 0x214   : > { %v1406_v36 = vpop.f32.mrf.mxu1 }
 0x215   : > { %v1536_v37 = vpack.c.bf16 %v1490_v40, %v1489_v32  ;;  %v1407_v41 = vadd.f32 %v3374_v30, %v1406_v36  ;;  %v1495_v50 = vmax.f32 %v1415_v42, 0.0 }
 0x216   : > { %v2919_v63 = vpop.f32.mrf.mxu1 }
 0x217   : > { %v1418_v14 = vadd.f32 %v2919_v63, %v3374_v30  ;;  %2984 = vmatprep.mubr.msk.bf16.mxu0 %vm1051_vm1, %v1536_v37  ;;  %v1493_v46 = vmax.f32 %v1407_v41, 0.0 }
 0x218   : > { %v1409_v39 = vpop.f32.mrf.mxu1  ;;  %2985 = vmatmul.mubr.msk.bf16.gmra.mxu0 %vm1051_vm1, %v1537_v38 }
 0x219   : > { %v1410_v49 = vadd.f32 %v3374_v30, %v1409_v39  ;;  %v1496_v43 = vmax.f32 %v1418_v14, 0.0 }
 0x21a   : > { %v2922_v44 = vpop.f32.mrf.mxu1 }
 0x21b   : > { %v1494_v47 = vmax.f32 %v1410_v49, 0.0  ;;  %v1539_v34 = vpack.c.bf16 %v1496_v43, %v1495_v50  ;;  %v1431_v58 = vadd.f32 %v2922_v44, %v3374_v30 }
 0x21c   : > { %v1422_v51 = vpop.f32.mrf.mxu1 }
 0x21d   : > { %v1538_v52 = vpack.c.bf16 %v1494_v47, %v1493_v46  ;;  %v1423_v55 = vadd.f32 %v3374_v30, %v1422_v51  ;;  %v1499_v60 = vmax.f32 %v1431_v58, 0.0 }
 0x21e   : > { %v2923_v53 = vpop.f32.mrf.mxu1 }
 0x21f   : > { %v1434_v8 = vadd.f32 %v2923_v53, %v3374_v30  ;;  %2988 = vmatprep.mubr.msk.bf16.mxu0 %vm1051_vm1, %v1538_v52  ;;  %v1497_v57 = vmax.f32 %v1423_v55, 0.0 }
 0x220   : > { %v1425_v4 = vpop.f32.mrf.mxu1  ;;  %2989 = vmatmul.mubr.msk.bf16.gmra.mxu0 %vm1051_vm1, %v1539_v34 }
 0x221   : > { %v1426_v56 = vadd.f32 %v3374_v30, %v1425_v4  ;;  %v1500_v17 = vmax.f32 %v1434_v8, 0.0 }
 0x223   : > { %v1498_v59 = vmax.f32 %v1426_v56, 0.0  ;;  %v1541_v62 = vpack.c.bf16 %v1500_v17, %v1499_v60 }
 0x225   : > { %v1540_v61 = vpack.c.bf16 %v1498_v59, %v1497_v57 }
 0x227   : > { %2992 = vmatprep.mubr.msk.bf16.mxu0 %vm1051_vm1, %v1540_v61 }
 0x228   : > { %2993 = vmatmul.mubr.msk.bf16.gmra.mxu0 %vm1051_vm1, %v1541_v62 }
 0x270   : > { %v2934_v1 = vpop.f32.mrf.mxu0 }
 0x271   : > { %v1711_v2 = vadd.f32 %v2934_v1, %v3475_v0 }
 0x272   : > { %v1702_v24 = vpop.f32.mrf.mxu0 }
 0x273   : > { %v1959_v30 = vmax.f32 %v1711_v2, 0.0  ;;  %v1703_v48 = vadd.f32 %v3475_v0, %v1702_v24 }
 0x274   : > { %v2935_v5 = vpop.f32.mrf.mxu0 }
 0x275   : > { %v2616_v6 = vpack.c.bf16 %v1959_v30, %v1959_v30  ;;  %v1957_v7 = vmax.f32 %v1703_v48, 0.0  ;;  %v1714_v10 = vadd.f32 %v2935_v5, %v3475_v0 }
 0x276   : > { %v1705_v26 = vpop.f32.mrf.mxu0 }
 0x277   : > { %2280 = vst.msk [vmem:[%s3484_s16 + $0x8] sm:$0xf] %vm2277_vm2, %v2616_v6  ;;  %v2614_v11 = vpack.c.bf16 %v1957_v7, %v1957_v7  ;;  %v1960_v13 = vmax.f32 %v1714_v10, 0.0  ;;  %v1706_v35 = vadd.f32 %v3475_v0, %v1705_v26 }
 0x278   : > { %v2938_v15 = vpop.f32.mrf.mxu0 }
 0x279   : > { %2278 = vst.msk [vmem:[%s3484_s16] sm:$0xf] %vm2277_vm2, %v2614_v11  ;;  %v2617_v3 = vpack.c.bf16 %v1960_v13, %v1960_v13  ;;  %v1958_v9 = vmax.f32 %v1706_v35, 0.0  ;;  %v1727_v12 = vadd.f32 %v2938_v15, %v3475_v0 }
 0x27a   : > { %v1718_v16 = vpop.f32.mrf.mxu0 }
 0x27b   : > { %2281 = vst.msk [vmem:[%s3484_s16 + $0xc] sm:$0xf] %vm2277_vm2, %v2617_v3  ;;  %v2615_v18 = vpack.c.bf16 %v1958_v9, %v1958_v9  ;;  %v1963_v19 = vmax.f32 %v1727_v12, 0.0  ;;  %v1719_v20 = vadd.f32 %v3475_v0, %v1718_v16 }
 0x27c   : > { %v2939_v22 = vpop.f32.mrf.mxu0 }
 0x27d   : > { %2279 = vst.msk [vmem:[%s3484_s16 + $0x4] sm:$0xf] %vm2277_vm2, %v2615_v18  ;;  %v2620_v23 = vpack.c.bf16 %v1963_v19, %v1963_v19  ;;  %v1961_v25 = vmax.f32 %v1719_v20, 0.0  ;;  %v1730_v27 = vadd.f32 %v2939_v22, %v3475_v0 }
 0x27e   : > { %v1721_v45 = vpop.f32.mrf.mxu0 }
 0x27f   : > { %2284 = vst.msk [vmem:[%s3484_s16 + $0x18] sm:$0xf] %vm2277_vm2, %v2620_v23  ;;  %v2618_v28 = vpack.c.bf16 %v1961_v25, %v1961_v25  ;;  %v1964_v54 = vmax.f32 %v1730_v27, 0.0  ;;  %v1722_v21 = vadd.f32 %v3475_v0, %v1721_v45 }
 0x280   : > { %v2942_v29 = vpop.f32.mrf.mxu0 }
 0x281   : > { %2282 = vst.msk [vmem:[%s3484_s16 + $0x10] sm:$0xf] %vm2277_vm2, %v2618_v28  ;;  %v2621_v31 = vpack.c.bf16 %v1964_v54, %v1964_v54  ;;  %v1962_v32 = vmax.f32 %v1722_v21, 0.0  ;;  %v1743_v40 = vadd.f32 %v2942_v29, %v3475_v0 }
 0x282   : > { %v1734_v33 = vpop.f32.mrf.mxu0 }
 0x283   : > { %2285 = vst.msk [vmem:[%s3484_s16 + $0x1c] sm:$0xf] %vm2277_vm2, %v2621_v31  ;;  %v2619_v36 = vpack.c.bf16 %v1962_v32, %v1962_v32  ;;  %v1967_v37 = vmax.f32 %v1743_v40, 0.0  ;;  %v1735_v38 = vadd.f32 %v3475_v0, %v1734_v33 }
 0x284   : > { %v2943_v63 = vpop.f32.mrf.mxu0 }
 0x285   : > { %2283 = vst.msk [vmem:[%s3484_s16 + $0x14] sm:$0xf] %vm2277_vm2, %v2619_v36  ;;  %v2624_v41 = vpack.c.bf16 %v1967_v37, %v1967_v37  ;;  %v1965_v14 = vmax.f32 %v1735_v38, 0.0  ;;  %v1746_v42 = vadd.f32 %v2943_v63, %v3475_v0 }
 0x286   : > { %v1737_v39 = vpop.f32.mrf.mxu0 }
 0x287   : > { %2288 = vst.msk [vmem:[%s3484_s16 + $0x28] sm:$0xf] %vm2277_vm2, %v2624_v41  ;;  %v2622_v49 = vpack.c.bf16 %v1965_v14, %v1965_v14  ;;  %v1968_v43 = vmax.f32 %v1746_v42, 0.0  ;;  %v1738_v44 = vadd.f32 %v3475_v0, %v1737_v39 }
 0x288   : > { %v2946_v46 = vpop.f32.mrf.mxu0 }
 0x289   : > { %2286 = vst.msk [vmem:[%s3484_s16 + $0x20] sm:$0xf] %vm2277_vm2, %v2622_v49  ;;  %v2625_v47 = vpack.c.bf16 %v1968_v43, %v1968_v43  ;;  %v1966_v50 = vmax.f32 %v1738_v44, 0.0  ;;  %v1759_v51 = vadd.f32 %v2946_v46, %v3475_v0 }
 0x28a   : > { %v1750_v52 = vpop.f32.mrf.mxu0 }
 0x28b   : > { %2289 = vst.msk [vmem:[%s3484_s16 + $0x2c] sm:$0xf] %vm2277_vm2, %v2625_v47  ;;  %v2623_v34 = vpack.c.bf16 %v1966_v50, %v1966_v50  ;;  %v1971_v53 = vmax.f32 %v1759_v51, 0.0  ;;  %v1751_v55 = vadd.f32 %v3475_v0, %v1750_v52 }
 0x28c   : > { %v2947_v8 = vpop.f32.mrf.mxu0 }
 0x28d   : > { %2287 = vst.msk [vmem:[%s3484_s16 + $0x24] sm:$0xf] %vm2277_vm2, %v2623_v34  ;;  %v2628_v58 = vpack.c.bf16 %v1971_v53, %v1971_v53  ;;  %v1969_v4 = vmax.f32 %v1751_v55, 0.0  ;;  %v1762_v56 = vadd.f32 %v2947_v8, %v3475_v0 }
 0x28e   : > { %v1753_v17 = vpop.f32.mrf.mxu0 }
 0x28f   : > { %2292 = vst.msk [vmem:[%s3484_s16 + $0x38] sm:$0xf] %vm2277_vm2, %v2628_v58  ;;  %v2626_v57 = vpack.c.bf16 %v1969_v4, %v1969_v4  ;;  %v1972_v59 = vmax.f32 %v1762_v56, 0.0  ;;  %v1754_v60 = vadd.f32 %v3475_v0, %v1753_v17 }
 0x290   : > { %v2950_v61 = vpop.f32.mrf.mxu0 }
 0x291   : > { %2290 = vst.msk [vmem:[%s3484_s16 + $0x30] sm:$0xf] %vm2277_vm2, %v2626_v57  ;;  %v2629_v62 = vpack.c.bf16 %v1972_v59, %v1972_v59  ;;  %v1970_v1 = vmax.f32 %v1754_v60, 0.0  ;;  %v1775_v2 = vadd.f32 %v2950_v61, %v3475_v0 }
 0x292   : > { %v1766_v24 = vpop.f32.mrf.mxu0 }
 0x293   : > { %2293 = vst.msk [vmem:[%s3484_s16 + $0x3c] sm:$0xf] %vm2277_vm2, %v2629_v62  ;;  %v2627_v30 = vpack.c.bf16 %v1970_v1, %v1970_v1  ;;  %v1975_v48 = vmax.f32 %v1775_v2, 0.0  ;;  %v1767_v5 = vadd.f32 %v3475_v0, %v1766_v24 }
 0x294   : > { %v2951_v6 = vpop.f32.mrf.mxu0 }
 0x295   : > { %2291 = vst.msk [vmem:[%s3484_s16 + $0x34] sm:$0xf] %vm2277_vm2, %v2627_v30  ;;  %v2632_v7 = vpack.c.bf16 %v1975_v48, %v1975_v48  ;;  %v1973_v10 = vmax.f32 %v1767_v5, 0.0  ;;  %v1778_v26 = vadd.f32 %v2951_v6, %v3475_v0 }
 0x296   : > { %v1769_v11 = vpop.f32.mrf.mxu0 }
 0x297   : > { %2296 = vst.msk [vmem:[%s3484_s16 + $0x48] sm:$0xf] %vm2277_vm2, %v2632_v7  ;;  %v2630_v13 = vpack.c.bf16 %v1973_v10, %v1973_v10  ;;  %v1976_v35 = vmax.f32 %v1778_v26, 0.0  ;;  %v1770_v15 = vadd.f32 %v3475_v0, %v1769_v11 }
 0x298   : > { %v2954_v3 = vpop.f32.mrf.mxu0 }
 0x299   : > { %2294 = vst.msk [vmem:[%s3484_s16 + $0x40] sm:$0xf] %vm2277_vm2, %v2630_v13  ;;  %v2633_v9 = vpack.c.bf16 %v1976_v35, %v1976_v35  ;;  %v1974_v12 = vmax.f32 %v1770_v15, 0.0  ;;  %v1791_v16 = vadd.f32 %v2954_v3, %v3475_v0 }
 0x29a   : > { %v1782_v18 = vpop.f32.mrf.mxu0 }
 0x29b   : > { %2297 = vst.msk [vmem:[%s3484_s16 + $0x4c] sm:$0xf] %vm2277_vm2, %v2633_v9  ;;  %v2631_v19 = vpack.c.bf16 %v1974_v12, %v1974_v12  ;;  %v1979_v20 = vmax.f32 %v1791_v16, 0.0  ;;  %v1783_v22 = vadd.f32 %v3475_v0, %v1782_v18 }
 0x29c   : > { %v2955_v23 = vpop.f32.mrf.mxu0 }
 0x29d   : > { %2295 = vst.msk [vmem:[%s3484_s16 + $0x44] sm:$0xf] %vm2277_vm2, %v2631_v19  ;;  %v2636_v25 = vpack.c.bf16 %v1979_v20, %v1979_v20  ;;  %v1977_v27 = vmax.f32 %v1783_v22, 0.0  ;;  %v1794_v45 = vadd.f32 %v2955_v23, %v3475_v0 }
 0x29e   : > { %v1785_v28 = vpop.f32.mrf.mxu0 }
 0x29f   : > { %2300 = vst.msk [vmem:[%s3484_s16 + $0x58] sm:$0xf] %vm2277_vm2, %v2636_v25  ;;  %v2634_v54 = vpack.c.bf16 %v1977_v27, %v1977_v27  ;;  %v1980_v21 = vmax.f32 %v1794_v45, 0.0  ;;  %v1786_v29 = vadd.f32 %v3475_v0, %v1785_v28 }
 0x2a0   : > { %v2958_v31 = vpop.f32.mrf.mxu0 }
 0x2a1   : > { %2298 = vst.msk [vmem:[%s3484_s16 + $0x50] sm:$0xf] %vm2277_vm2, %v2634_v54  ;;  %v2637_v32 = vpack.c.bf16 %v1980_v21, %v1980_v21  ;;  %v1978_v40 = vmax.f32 %v1786_v29, 0.0  ;;  %v1807_v33 = vadd.f32 %v2958_v31, %v3475_v0 }
 0x2a2   : > { %v1798_v36 = vpop.f32.mrf.mxu0 }
 0x2a3   : > { %2301 = vst.msk [vmem:[%s3484_s16 + $0x5c] sm:$0xf] %vm2277_vm2, %v2637_v32  ;;  %v2635_v37 = vpack.c.bf16 %v1978_v40, %v1978_v40  ;;  %v1983_v38 = vmax.f32 %v1807_v33, 0.0  ;;  %v1799_v63 = vadd.f32 %v3475_v0, %v1798_v36 }
 0x2a4   : > { %v2959_v41 = vpop.f32.mrf.mxu0 }
 0x2a5   : > { %2299 = vst.msk [vmem:[%s3484_s16 + $0x54] sm:$0xf] %vm2277_vm2, %v2635_v37  ;;  %v2640_v14 = vpack.c.bf16 %v1983_v38, %v1983_v38  ;;  %v1981_v42 = vmax.f32 %v1799_v63, 0.0  ;;  %v1810_v39 = vadd.f32 %v2959_v41, %v3475_v0 }
 0x2a6   : > { %v1801_v49 = vpop.f32.mrf.mxu0 }
 0x2a7   : > { %2304 = vst.msk [vmem:[%s3484_s16 + $0x68] sm:$0xf] %vm2277_vm2, %v2640_v14  ;;  %v2638_v43 = vpack.c.bf16 %v1981_v42, %v1981_v42  ;;  %v1984_v44 = vmax.f32 %v1810_v39, 0.0  ;;  %v1802_v46 = vadd.f32 %v3475_v0, %v1801_v49 }
 0x2a8   : > { %v2962_v47 = vpop.f32.mrf.mxu0 }
 0x2a9   : > { %2302 = vst.msk [vmem:[%s3484_s16 + $0x60] sm:$0xf] %vm2277_vm2, %v2638_v43  ;;  %v2641_v50 = vpack.c.bf16 %v1984_v44, %v1984_v44  ;;  %v1982_v51 = vmax.f32 %v1802_v46, 0.0  ;;  %v1823_v52 = vadd.f32 %v2962_v47, %v3475_v0 }
 0x2aa   : > { %v1814_v34 = vpop.f32.mrf.mxu0 }
 0x2ab   : > { %2305 = vst.msk [vmem:[%s3484_s16 + $0x6c] sm:$0xf] %vm2277_vm2, %v2641_v50  ;;  %v2639_v53 = vpack.c.bf16 %v1982_v51, %v1982_v51  ;;  %v1987_v55 = vmax.f32 %v1823_v52, 0.0  ;;  %v1815_v8 = vadd.f32 %v3475_v0, %v1814_v34 }
 0x2ac   : > { %v2963_v58 = vpop.f32.mrf.mxu0 }
 0x2ad   : > { %2303 = vst.msk [vmem:[%s3484_s16 + $0x64] sm:$0xf] %vm2277_vm2, %v2639_v53  ;;  %v2644_v4 = vpack.c.bf16 %v1987_v55, %v1987_v55  ;;  %v1985_v56 = vmax.f32 %v1815_v8, 0.0  ;;  %v1826_v17 = vadd.f32 %v2963_v58, %v3475_v0 }
 0x2ae   : > { %v1817_v57 = vpop.f32.mrf.mxu0 }
 0x2af   : > { %2308 = vst.msk [vmem:[%s3484_s16 + $0x78] sm:$0xf] %vm2277_vm2, %v2644_v4  ;;  %v2642_v59 = vpack.c.bf16 %v1985_v56, %v1985_v56  ;;  %v1988_v60 = vmax.f32 %v1826_v17, 0.0  ;;  %v1818_v61 = vadd.f32 %v3475_v0, %v1817_v57 }
 0x2b0   : > { %v2966_v62 = vpop.f32.mrf.mxu0 }
 0x2b1   : > { %2306 = vst.msk [vmem:[%s3484_s16 + $0x70] sm:$0xf] %vm2277_vm2, %v2642_v59  ;;  %v2645_v1 = vpack.c.bf16 %v1988_v60, %v1988_v60  ;;  %v1986_v2 = vmax.f32 %v1818_v61, 0.0  ;;  %v1839_v24 = vadd.f32 %v2966_v62, %v3475_v0 }
 0x2b2   : > { %v1830_v30 = vpop.f32.mrf.mxu0 }
 0x2b3   : > { %2309 = vst.msk [vmem:[%s3484_s16 + $0x7c] sm:$0xf] %vm2277_vm2, %v2645_v1  ;;  %v2643_v48 = vpack.c.bf16 %v1986_v2, %v1986_v2  ;;  %v1991_v5 = vmax.f32 %v1839_v24, 0.0  ;;  %v1831_v6 = vadd.f32 %v3475_v0, %v1830_v30 }
 0x2b4   : > { %v2967_v7 = vpop.f32.mrf.mxu0 }
 0x2b5   : > { %2307 = vst.msk [vmem:[%s3484_s16 + $0x74] sm:$0xf] %vm2277_vm2, %v2643_v48  ;;  %v2648_v10 = vpack.c.bf16 %v1991_v5, %v1991_v5  ;;  %v1989_v26 = vmax.f32 %v1831_v6, 0.0  ;;  %v1842_v11 = vadd.f32 %v2967_v7, %v3475_v0 }
 0x2b6   : > { %v1833_v13 = vpop.f32.mrf.mxu0 }
 0x2b7   : > { %2312 = vst.msk [vmem:[%s3484_s16 + $0x88] sm:$0xf] %vm2277_vm2, %v2648_v10  ;;  %v2646_v35 = vpack.c.bf16 %v1989_v26, %v1989_v26  ;;  %v1992_v15 = vmax.f32 %v1842_v11, 0.0  ;;  %v1834_v3 = vadd.f32 %v3475_v0, %v1833_v13 }
 0x2b8   : > { %v2970_v9 = vpop.f32.mrf.mxu0 }
 0x2b9   : > { %2310 = vst.msk [vmem:[%s3484_s16 + $0x80] sm:$0xf] %vm2277_vm2, %v2646_v35  ;;  %v2649_v12 = vpack.c.bf16 %v1992_v15, %v1992_v15  ;;  %v1990_v16 = vmax.f32 %v1834_v3, 0.0  ;;  %v1855_v18 = vadd.f32 %v2970_v9, %v3475_v0 }
 0x2ba   : > { %v1846_v19 = vpop.f32.mrf.mxu0 }
 0x2bb   : > { %2313 = vst.msk [vmem:[%s3484_s16 + $0x8c] sm:$0xf] %vm2277_vm2, %v2649_v12  ;;  %v2647_v20 = vpack.c.bf16 %v1990_v16, %v1990_v16  ;;  %v1995_v22 = vmax.f32 %v1855_v18, 0.0  ;;  %v1847_v23 = vadd.f32 %v3475_v0, %v1846_v19 }
 0x2bc   : > { %v2971_v25 = vpop.f32.mrf.mxu0 }
 0x2bd   : > { %2311 = vst.msk [vmem:[%s3484_s16 + $0x84] sm:$0xf] %vm2277_vm2, %v2647_v20  ;;  %v2652_v27 = vpack.c.bf16 %v1995_v22, %v1995_v22  ;;  %v1993_v45 = vmax.f32 %v1847_v23, 0.0  ;;  %v1858_v28 = vadd.f32 %v2971_v25, %v3475_v0 }
 0x2be   : > { %v1849_v54 = vpop.f32.mrf.mxu0 }
 0x2bf   : > { %2316 = vst.msk [vmem:[%s3484_s16 + $0x98] sm:$0xf] %vm2277_vm2, %v2652_v27  ;;  %v2650_v21 = vpack.c.bf16 %v1993_v45, %v1993_v45  ;;  %v1996_v29 = vmax.f32 %v1858_v28, 0.0  ;;  %v1850_v31 = vadd.f32 %v3475_v0, %v1849_v54 }
 0x2c0   : > { %v2974_v32 = vpop.f32.mrf.mxu0 }
 0x2c1   : > { %2314 = vst.msk [vmem:[%s3484_s16 + $0x90] sm:$0xf] %vm2277_vm2, %v2650_v21  ;;  %v2653_v40 = vpack.c.bf16 %v1996_v29, %v1996_v29  ;;  %v1994_v33 = vmax.f32 %v1850_v31, 0.0  ;;  %v1871_v36 = vadd.f32 %v2974_v32, %v3475_v0 }
 0x2c2   : > { %v1862_v37 = vpop.f32.mrf.mxu0 }
 0x2c3   : > { %2317 = vst.msk [vmem:[%s3484_s16 + $0x9c] sm:$0xf] %vm2277_vm2, %v2653_v40  ;;  %v2651_v38 = vpack.c.bf16 %v1994_v33, %v1994_v33  ;;  %v1999_v63 = vmax.f32 %v1871_v36, 0.0  ;;  %v1863_v41 = vadd.f32 %v3475_v0, %v1862_v37 }
 0x2c4   : > { %v2975_v14 = vpop.f32.mrf.mxu0 }
 0x2c5   : > { %2315 = vst.msk [vmem:[%s3484_s16 + $0x94] sm:$0xf] %vm2277_vm2, %v2651_v38  ;;  %v2656_v42 = vpack.c.bf16 %v1999_v63, %v1999_v63  ;;  %v1997_v39 = vmax.f32 %v1863_v41, 0.0  ;;  %v1874_v49 = vadd.f32 %v2975_v14, %v3475_v0 }
 0x2c6   : > { %v1865_v43 = vpop.f32.mrf.mxu0 }
 0x2c7   : > { %2320 = vst.msk [vmem:[%s3484_s16 + $0xa8] sm:$0xf] %vm2277_vm2, %v2656_v42  ;;  %v2654_v44 = vpack.c.bf16 %v1997_v39, %v1997_v39  ;;  %v2000_v46 = vmax.f32 %v1874_v49, 0.0  ;;  %v1866_v47 = vadd.f32 %v3475_v0, %v1865_v43 }
 0x2c8   : > { %v2978_v50 = vpop.f32.mrf.mxu0 }
 0x2c9   : > { %2318 = vst.msk [vmem:[%s3484_s16 + $0xa0] sm:$0xf] %vm2277_vm2, %v2654_v44  ;;  %v2657_v51 = vpack.c.bf16 %v2000_v46, %v2000_v46  ;;  %v1998_v52 = vmax.f32 %v1866_v47, 0.0  ;;  %v1887_v34 = vadd.f32 %v2978_v50, %v3475_v0 }
 0x2ca   : > { %v1878_v53 = vpop.f32.mrf.mxu0 }
 0x2cb   : > { %2321 = vst.msk [vmem:[%s3484_s16 + $0xac] sm:$0xf] %vm2277_vm2, %v2657_v51  ;;  %v2655_v55 = vpack.c.bf16 %v1998_v52, %v1998_v52  ;;  %v2003_v8 = vmax.f32 %v1887_v34, 0.0  ;;  %v1879_v58 = vadd.f32 %v3475_v0, %v1878_v53 }
 0x2cc   : > { %v2979_v4 = vpop.f32.mrf.mxu0 }
 0x2cd   : > { %2319 = vst.msk [vmem:[%s3484_s16 + $0xa4] sm:$0xf] %vm2277_vm2, %v2655_v55  ;;  %v2660_v56 = vpack.c.bf16 %v2003_v8, %v2003_v8  ;;  %v2001_v17 = vmax.f32 %v1879_v58, 0.0  ;;  %v1890_v57 = vadd.f32 %v2979_v4, %v3475_v0 }
 0x2ce   : > { %v1881_v59 = vpop.f32.mrf.mxu0 }
 0x2cf   : > { %2324 = vst.msk [vmem:[%s3484_s16 + $0xb8] sm:$0xf] %vm2277_vm2, %v2660_v56  ;;  %v2658_v60 = vpack.c.bf16 %v2001_v17, %v2001_v17  ;;  %v2004_v61 = vmax.f32 %v1890_v57, 0.0  ;;  %v1882_v62 = vadd.f32 %v3475_v0, %v1881_v59 }
 0x2d0   : > { %v2982_v1 = vpop.f32.mrf.mxu0 }
 0x2d1   : > { %2322 = vst.msk [vmem:[%s3484_s16 + $0xb0] sm:$0xf] %vm2277_vm2, %v2658_v60  ;;  %v2661_v2 = vpack.c.bf16 %v2004_v61, %v2004_v61  ;;  %v2002_v24 = vmax.f32 %v1882_v62, 0.0  ;;  %v1903_v30 = vadd.f32 %v2982_v1, %v3475_v0 }
 0x2d2   : > { %v1894_v48 = vpop.f32.mrf.mxu0 }
 0x2d3   : > { %2325 = vst.msk [vmem:[%s3484_s16 + $0xbc] sm:$0xf] %vm2277_vm2, %v2661_v2  ;;  %v2659_v5 = vpack.c.bf16 %v2002_v24, %v2002_v24  ;;  %v2007_v6 = vmax.f32 %v1903_v30, 0.0  ;;  %v1895_v7 = vadd.f32 %v3475_v0, %v1894_v48 }
 0x2d4   : > { %v2983_v10 = vpop.f32.mrf.mxu0 }
 0x2d5   : > { %2323 = vst.msk [vmem:[%s3484_s16 + $0xb4] sm:$0xf] %vm2277_vm2, %v2659_v5  ;;  %v2664_v26 = vpack.c.bf16 %v2007_v6, %v2007_v6  ;;  %v2005_v11 = vmax.f32 %v1895_v7, 0.0  ;;  %v1906_v13 = vadd.f32 %v2983_v10, %v3475_v0 }
 0x2d6   : > { %v1897_v35 = vpop.f32.mrf.mxu0 }
 0x2d7   : > { %2328 = vst.msk [vmem:[%s3484_s16 + $0xc8] sm:$0xf] %vm2277_vm2, %v2664_v26  ;;  %v2662_v15 = vpack.c.bf16 %v2005_v11, %v2005_v11  ;;  %v2008_v3 = vmax.f32 %v1906_v13, 0.0  ;;  %v1898_v9 = vadd.f32 %v3475_v0, %v1897_v35 }
 0x2d8   : > { %v2986_v12 = vpop.f32.mrf.mxu0 }
 0x2d9   : > { %2326 = vst.msk [vmem:[%s3484_s16 + $0xc0] sm:$0xf] %vm2277_vm2, %v2662_v15  ;;  %v2665_v16 = vpack.c.bf16 %v2008_v3, %v2008_v3  ;;  %v2006_v18 = vmax.f32 %v1898_v9, 0.0  ;;  %v1919_v19 = vadd.f32 %v2986_v12, %v3475_v0 }
 0x2da   : > { %v1910_v20 = vpop.f32.mrf.mxu0 }
 0x2db   : > { %2329 = vst.msk [vmem:[%s3484_s16 + $0xcc] sm:$0xf] %vm2277_vm2, %v2665_v16  ;;  %v2663_v22 = vpack.c.bf16 %v2006_v18, %v2006_v18  ;;  %v2011_v23 = vmax.f32 %v1919_v19, 0.0  ;;  %v1911_v25 = vadd.f32 %v3475_v0, %v1910_v20 }
 0x2dc   : > { %v2987_v27 = vpop.f32.mrf.mxu0 }
 0x2dd   : > { %2327 = vst.msk [vmem:[%s3484_s16 + $0xc4] sm:$0xf] %vm2277_vm2, %v2663_v22  ;;  %v2668_v45 = vpack.c.bf16 %v2011_v23, %v2011_v23  ;;  %v2009_v28 = vmax.f32 %v1911_v25, 0.0  ;;  %v1922_v54 = vadd.f32 %v2987_v27, %v3475_v0 }
 0x2de   : > { %v1913_v21 = vpop.f32.mrf.mxu0 }
 0x2df   : > { %2332 = vst.msk [vmem:[%s3484_s16 + $0xd8] sm:$0xf] %vm2277_vm2, %v2668_v45  ;;  %v2666_v29 = vpack.c.bf16 %v2009_v28, %v2009_v28  ;;  %v2012_v31 = vmax.f32 %v1922_v54, 0.0  ;;  %v1914_v32 = vadd.f32 %v3475_v0, %v1913_v21 }
 0x2e0   : > { %v2990_v40 = vpop.f32.mrf.mxu0 }
 0x2e1   : > { %2330 = vst.msk [vmem:[%s3484_s16 + $0xd0] sm:$0xf] %vm2277_vm2, %v2666_v29  ;;  %v2669_v33 = vpack.c.bf16 %v2012_v31, %v2012_v31  ;;  %v2010_v36 = vmax.f32 %v1914_v32, 0.0  ;;  %v1935_v37 = vadd.f32 %v2990_v40, %v3475_v0 }
 0x2e2   : > { %v1926_v38 = vpop.f32.mrf.mxu0 }
 0x2e3   : > { %2333 = vst.msk [vmem:[%s3484_s16 + $0xdc] sm:$0xf] %vm2277_vm2, %v2669_v33  ;;  %v2667_v63 = vpack.c.bf16 %v2010_v36, %v2010_v36  ;;  %v2015_v41 = vmax.f32 %v1935_v37, 0.0  ;;  %v1927_v14 = vadd.f32 %v3475_v0, %v1926_v38 }
 0x2e4   : > { %v2991_v42 = vpop.f32.mrf.mxu0 }
 0x2e5   : > { %2331 = vst.msk [vmem:[%s3484_s16 + $0xd4] sm:$0xf] %vm2277_vm2, %v2667_v63  ;;  %v2672_v39 = vpack.c.bf16 %v2015_v41, %v2015_v41  ;;  %v2013_v49 = vmax.f32 %v1927_v14, 0.0  ;;  %v1938_v43 = vadd.f32 %v2991_v42, %v3475_v0 }
 0x2e6   : > { %v1929_v44 = vpop.f32.mrf.mxu0 }
 0x2e7   : > { %2336 = vst.msk [vmem:[%s3484_s16 + $0xe8] sm:$0xf] %vm2277_vm2, %v2672_v39  ;;  %v2670_v46 = vpack.c.bf16 %v2013_v49, %v2013_v49  ;;  %v2016_v47 = vmax.f32 %v1938_v43, 0.0  ;;  %v1930_v50 = vadd.f32 %v3475_v0, %v1929_v44 }
 0x2e8   : > { %v2994_v51 = vpop.f32.mrf.mxu0 }
 0x2e9   : > { %2334 = vst.msk [vmem:[%s3484_s16 + $0xe0] sm:$0xf] %vm2277_vm2, %v2670_v46  ;;  %v2673_v52 = vpack.c.bf16 %v2016_v47, %v2016_v47  ;;  %v2014_v34 = vmax.f32 %v1930_v50, 0.0  ;;  %v1951_v53 = vadd.f32 %v2994_v51, %v3475_v0 }
 0x2ea   : > { %v1942_v55 = vpop.f32.mrf.mxu0 }
 0x2eb   : > { %2337 = vst.msk [vmem:[%s3484_s16 + $0xec] sm:$0xf] %vm2277_vm2, %v2673_v52  ;;  %v2671_v8 = vpack.c.bf16 %v2014_v34, %v2014_v34  ;;  %v2019_v58 = vmax.f32 %v1951_v53, 0.0  ;;  %v1943_v4 = vadd.f32 %v3475_v0, %v1942_v55 }
 0x2ec   : > { %v2995_v56 = vpop.f32.mrf.mxu0 }
 0x2ed   : > { %2335 = vst.msk [vmem:[%s3484_s16 + $0xe4] sm:$0xf] %vm2277_vm2, %v2671_v8  ;;  %v2676_v17 = vpack.c.bf16 %v2019_v58, %v2019_v58  ;;  %v2017_v57 = vmax.f32 %v1943_v4, 0.0  ;;  %v1954_v59 = vadd.f32 %v2995_v56, %v3475_v0 }
 0x2ee   : > { %v1945_v60 = vpop.f32.mrf.mxu0 }
 0x2ef   : > { %2340 = vst.msk [vmem:[%s3484_s16 + $0xf8] sm:$0xf] %vm2277_vm2, %v2676_v17  ;;  %v2674_v61 = vpack.c.bf16 %v2017_v57, %v2017_v57  ;;  %v2020_v62 = vmax.f32 %v1954_v59, 0.0  ;;  %v1946_v1 = vadd.f32 %v3475_v0, %v1945_v60 }
 0x2f1   : > { %2338 = vst.msk [vmem:[%s3484_s16 + $0xf0] sm:$0xf] %vm2277_vm2, %v2674_v61  ;;  %v2677_v2 = vpack.c.bf16 %v2020_v62, %v2020_v62  ;;  %v2018_v24 = vmax.f32 %v1946_v1, 0.0 }
 0x2f3   : > { %2341 = vst.msk [vmem:[%s3484_s16 + $0xfc] sm:$0xf] %vm2277_vm2, %v2677_v2  ;;  %v2675_v30 = vpack.c.bf16 %v2018_v24, %v2018_v24 }
 0x2f5   : > { %2339 = vst.msk [vmem:[%s3484_s16 + $0xf4] sm:$0xf] %vm2277_vm2, %v2675_v30 }
 0x2f6 PF: > { %s17_s24 = sadd.s32 1, %s3056_s24  }
 0x2f7   : > { %p14_p4 = scmp.ge.s32.totalorder %s17_s24, 4  }
 0x2f9   :  { %16 = sbr.rel (!%p14_p4) target bundleno = 1 (0x1), region = 78 }

</bundles_post_ra>
